<compile_context>
chip_gen: v7x
topology: tpu7x:2x2x1
jax: 0.10.0
libtpu: 0.0.40
codegen_flags: <defaults>
</compile_context>

<pallas_src>
import jax
import jax.numpy as jnp
from jax.experimental import pallas as pl
from jax.experimental.pallas import tpu as pltpu

IN_DIM = 100 * 100   # 10000
H1 = 256
H2 = 128
OUT_DIM = 22

TK = 2048            # fc1 contraction tile (multiple of 128); bf16 W1 tile = 1 MiB
K_PAD = 10240        # IN_DIM padded up to a multiple of TK (zero-padded cols/rows)
OUT_PAD = 128        # lane-dense padded output width (sliced back to 22 in wrapper)
TM_MAX = 256         # max batch tile


def _round_up(x, m):
    return (x + m - 1) // m * m


def mlp_kernel(x_ref, w1_ref, b1_ref, w2_ref, b2_ref, w3_ref, b3_ref, o_ref, acc_ref):
    k = pl.program_id(1)

    @pl.when(k == 0)
    def _():
        acc_ref[...] = jnp.zeros_like(acc_ref)

    # fc1 partial product: (tm, TK) @ (TK, H1), bf16 on the MXU, f32 accumulation.
    acc_ref[...] += jnp.dot(
        x_ref[...].astype(jnp.bfloat16), w1_ref[...],
        preferred_element_type=jnp.float32,
    )

    # Epilogue: only once the full fc1 contraction has been accumulated.
    @pl.when(k == pl.num_programs(1) - 1)
    def _():
        h1 = acc_ref[...] + b1_ref[...]          # fc1 bias
        # dropout (eval mode -> identity)
        h1 = jnp.maximum(h1, 0.0)                # relu
        h2 = jnp.dot(h1, w2_ref[...], preferred_element_type=jnp.float32) + b2_ref[...]
        # dropout (eval mode -> identity)
        h2 = jax.nn.sigmoid(h2)
        h3 = jnp.dot(h2, w3_ref[...], preferred_element_type=jnp.float32) + b3_ref[...]
        o_ref[...] = h3.astype(o_ref.dtype)


def linear_mlp_forward(x_nchw, params):
    """x_nchw: (B, 1, 100, 100) float32. params: dict of f32 weights/biases."""
    B = x_nchw.shape[0]
    x = x_nchw.reshape(B, -1).astype(jnp.float32)   # nn.Flatten(start_dim=1)

    # Batch tile: (8,128)-aligned; small batches use one padded tile, large ones TM_MAX.
    tm = TM_MAX if B >= TM_MAX else max(8, _round_up(B, 8))
    B_pad = _round_up(B, tm)

    # Zero-pad batch rows and the fc1 contraction dim (10000 -> 10240).
    x = jnp.pad(x, ((0, B_pad - B), (0, K_PAD - IN_DIM)))

    # Weight prep (plain-JAX glue): W1 bf16 + K-padded; W3/b3 lane-padded to 128.
    w1 = jnp.pad(params["w1"], ((0, K_PAD - IN_DIM), (0, 0))).astype(jnp.bfloat16)
    b1 = params["b1"].astype(jnp.float32)
    w2 = params["w2"].astype(jnp.float32)
    b2 = params["b2"].astype(jnp.float32)
    w3 = jnp.pad(params["w3"], ((0, 0), (0, OUT_PAD - OUT_DIM))).astype(jnp.float32)
    b3 = jnp.pad(params["b3"], ((0, 0), (0, OUT_PAD - OUT_DIM))).astype(jnp.float32)

    n_b = B_pad // tm
    n_k = K_PAD // TK

    grid_spec = pltpu.PrefetchScalarGridSpec(
        num_scalar_prefetch=0,
        grid=(n_b, n_k),                                        # K innermost (reduction)
        in_specs=[
            pl.BlockSpec((tm, TK), lambda i, k: (i, k)),        # x tile
            pl.BlockSpec((TK, H1), lambda i, k: (k, 0)),        # W1 streamed over k
            pl.BlockSpec((1, H1), lambda i, k: (0, 0)),         # b1 (resident)
            pl.BlockSpec((H1, H2), lambda i, k: (0, 0)),        # W2 (resident)
            pl.BlockSpec((1, H2), lambda i, k: (0, 0)),         # b2 (resident)
            pl.BlockSpec((H2, OUT_PAD), lambda i, k: (0, 0)),   # W3 (resident)
            pl.BlockSpec((1, OUT_PAD), lambda i, k: (0, 0)),    # b3 (resident)
        ],
        out_specs=pl.BlockSpec((tm, OUT_PAD), lambda i, k: (i, 0)),
        scratch_shapes=[pltpu.VMEM((tm, H1), jnp.float32)],     # fc1 accumulator
    )

    flops = 2 * B_pad * (K_PAD * H1 + H1 * H2 + H2 * OUT_PAD)
    bytes_accessed = (
        x.size * 4 + w1.size * 2
        + (b1.size + w2.size + b2.size + w3.size + b3.size) * 4
        + B_pad * OUT_PAD * 4
    )

    out = pl.pallas_call(
        mlp_kernel,
        out_shape=jax.ShapeDtypeStruct((B_pad, OUT_PAD), jnp.float32),
        grid_spec=grid_spec,
        compiler_params=pltpu.CompilerParams(
            dimension_semantics=("parallel", "arbitrary"),
        ),
        cost_estimate=pl.CostEstimate(
            flops=flops,
            transcendentals=B_pad * H2,
            bytes_accessed=bytes_accessed,
        ),
    )(x, w1, b1, w2, b2, w3, b3)

    return out[:B, :OUT_DIM]


def init_params(key):
    """Deterministic init mimicking nn.Linear default: U(-1/sqrt(fan_in), 1/sqrt(fan_in)).
    Weights are stored pre-transposed as (in_features, out_features), f32."""
    keys = jax.random.split(key, 6)

    def uniform(k, shape, fan_in):
        bound = 1.0 / jnp.sqrt(fan_in)
        return jax.random.uniform(k, shape, jnp.float32, -bound, bound)

    return {
        "w1": uniform(keys[0], (IN_DIM, H1), IN_DIM),
        "b1": uniform(keys[1], (1, H1), IN_DIM),
        "w2": uniform(keys[2], (H1, H2), H1),
        "b2": uniform(keys[3], (1, H2), H1),
        "w3": uniform(keys[4], (H2, OUT_DIM), H2),
        "b3": uniform(keys[5], (1, OUT_DIM), H2),
    }


def reference_forward_matched(x_nchw, params):
    """f32 reference using the same bf16-rounded x/W1 the kernel consumes
    (isolates accumulation-order differences only)."""
    x = x_nchw.reshape(x_nchw.shape[0], -1)
    x = x.astype(jnp.bfloat16).astype(jnp.float32)
    w1 = params["w1"].astype(jnp.bfloat16).astype(jnp.float32)
    h1 = x @ w1 + params["b1"]
    h2 = jnp.maximum(h1, 0.0) @ params["w2"] + params["b2"]
    h3 = jax.nn.sigmoid(h2) @ params["w3"] + params["b3"]
    return h3


if __name__ == "__main__":
    key = jax.random.PRNGKey(0)
    k_x, k_p = jax.random.split(key)

    B = 2
    x = jax.random.normal(k_x, (B, 1, 100, 100), dtype=jnp.float32)
    params = init_params(k_p)

    out = jax.block_until_ready(linear_mlp_forward(x, params))

    ref = reference_forward_matched(x, params)
    assert out.shape == (B, OUT_DIM), out.shape
    assert jnp.allclose(out, ref, atol=2e-3, rtol=2e-3), (
        "mismatch vs reference, max abs diff = %f" % float(jnp.max(jnp.abs(out - ref)))
    )

    print("KERNEL_OK")
</pallas_src>

<mosaic_0001>
module attributes {stable_mosaic.version = 11 : i64} {
  func.func @mlp_kernel(%arg0: i32, %arg1: i32, %arg2: memref<8x2048xf32, #tpu.memory_space<vmem>>, %arg3: memref<2048x256xbf16, #tpu.memory_space<vmem>>, %arg4: memref<1x256xf32, #tpu.memory_space<vmem>>, %arg5: memref<256x128xf32, #tpu.memory_space<vmem>>, %arg6: memref<1x128xf32, #tpu.memory_space<vmem>>, %arg7: memref<128x128xf32, #tpu.memory_space<vmem>>, %arg8: memref<1x128xf32, #tpu.memory_space<vmem>>, %arg9: memref<8x128xf32, #tpu.memory_space<vmem>>, %arg10: memref<8x256xf32, #tpu.memory_space<vmem>>) attributes {dimension_semantics = [#tpu.dimension_semantics<parallel>, #tpu.dimension_semantics<arbitrary>], iteration_bounds = array<i64: 1, 5>, scalar_prefetch = 0 : i64, scratch_operands = 1 : i64, tpu.core_type = #tpu.core_type<tc>, window_params = [{transform_indices = @transform_0, window_bounds = array<i64: 8, 2048>}, {transform_indices = @transform_1, window_bounds = array<i64: 2048, 256>}, {pipeline_mode = #tpu.pipeline_mode<synchronous>, transform_indices = @transform_2, window_bounds = array<i64: 1, 256>}, {pipeline_mode = #tpu.pipeline_mode<synchronous>, transform_indices = @transform_3, window_bounds = array<i64: 256, 128>}, {pipeline_mode = #tpu.pipeline_mode<synchronous>, transform_indices = @transform_4, window_bounds = array<i64: 1, 128>}, {pipeline_mode = #tpu.pipeline_mode<synchronous>, transform_indices = @transform_5, window_bounds = array<i64: 128, 128>}, {pipeline_mode = #tpu.pipeline_mode<synchronous>, transform_indices = @transform_6, window_bounds = array<i64: 1, 128>}, {transform_indices = @transform_7, window_bounds = array<i64: 8, 128>}]} {
    %c0_i32 = arith.constant 0 : i32
    %0 = arith.cmpi eq, %arg1, %c0_i32 : i32
    %1 = arith.extui %0 : i1 to i32
    %c0_i32_0 = arith.constant 0 : i32
    %2 = arith.cmpi ne, %1, %c0_i32_0 : i32
    scf.if %2 {
      %cst_9 = arith.constant 0.000000e+00 : f32
      %13 = vector.broadcast %cst_9 : f32 to vector<8x256xf32>
      %c0_10 = arith.constant 0 : index
      %c0_11 = arith.constant 0 : index
      %14 = vector.load %arg10[%c0_10, %c0_11] : memref<8x256xf32, #tpu.memory_space<vmem>>, vector<8x256xf32>
      tpu.vector_store %arg10[%c0_10, %c0_11], %13 {strides = array<i32>} : memref<8x256xf32, #tpu.memory_space<vmem>>, vector<8x256xf32>,
    } else {
    }
    %c0 = arith.constant 0 : index
    %c0_1 = arith.constant 0 : index
    %3 = vector.load %arg10[%c0, %c0_1] : memref<8x256xf32, #tpu.memory_space<vmem>>, vector<8x256xf32>
    %c0_2 = arith.constant 0 : index
    %c0_3 = arith.constant 0 : index
    %4 = vector.load %arg2[%c0_2, %c0_3] : memref<8x2048xf32, #tpu.memory_space<vmem>>, vector<8x2048xf32>
    %5 = arith.truncf %4 : vector<8x2048xf32> to vector<8x2048xbf16>
    %c0_4 = arith.constant 0 : index
    %c0_5 = arith.constant 0 : index
    %6 = vector.load %arg3[%c0_4, %c0_5] : memref<2048x256xbf16, #tpu.memory_space<vmem>>, vector<2048x256xbf16>
    %cst = arith.constant dense<0.000000e+00> : vector<8x256xf32>
    %7 = tpu.matmul %5, %6, %cst {dimension_numbers = #tpu.dot_dimension_numbers<[1], [0], [0], [1], [0, 0, 1, 1], [], []>} : vector<8x2048xbf16>, vector<2048x256xbf16>, vector<8x256xf32> -> vector<8x256xf32>
    %8 = arith.addf %3, %7 : vector<8x256xf32>
    %c0_6 = arith.constant 0 : index
    %c0_7 = arith.constant 0 : index
    %9 = vector.load %arg10[%c0_6, %c0_7] : memref<8x256xf32, #tpu.memory_space<vmem>>, vector<8x256xf32>
    tpu.vector_store %arg10[%c0_6, %c0_7], %8 {strides = array<i32>} : memref<8x256xf32, #tpu.memory_space<vmem>>, vector<8x256xf32>,
    %c4_i32 = arith.constant 4 : i32
    %10 = arith.cmpi eq, %arg1, %c4_i32 : i32
    %11 = arith.extui %10 : i1 to i32
    %c0_i32_8 = arith.constant 0 : i32
    %12 = arith.cmpi ne, %11, %c0_i32_8 : i32
    scf.if %12 {
      %c0_9 = arith.constant 0 : index
      %c0_10 = arith.constant 0 : index
      %13 = vector.load %arg10[%c0_9, %c0_10] : memref<8x256xf32, #tpu.memory_space<vmem>>, vector<8x256xf32>
      %c0_11 = arith.constant 0 : index
      %c0_12 = arith.constant 0 : index
      %14 = vector.load %arg4[%c0_11, %c0_12] : memref<1x256xf32, #tpu.memory_space<vmem>>, vector<1x256xf32>
      %15 = vector.broadcast %14 : vector<1x256xf32> to vector<8x256xf32>
      %16 = arith.addf %13, %15 : vector<8x256xf32>
      %cst_13 = arith.constant 0.000000e+00 : f32
      %17 = vector.broadcast %cst_13 : f32 to vector<8x256xf32>
      %18 = arith.maximumf %16, %17 : vector<8x256xf32>
      %c0_14 = arith.constant 0 : index
      %c0_15 = arith.constant 0 : index
      %19 = vector.load %arg5[%c0_14, %c0_15] : memref<256x128xf32, #tpu.memory_space<vmem>>, vector<256x128xf32>
      %cst_16 = arith.constant dense<0.000000e+00> : vector<8x128xf32>
      %20 = tpu.matmul %18, %19, %cst_16 {dimension_numbers = #tpu.dot_dimension_numbers<[1], [0], [0], [1], [0, 0, 1, 1], [], []>} : vector<8x256xf32>, vector<256x128xf32>, vector<8x128xf32> -> vector<8x128xf32>
      %c0_17 = arith.constant 0 : index
      %c0_18 = arith.constant 0 : index
      %21 = vector.load %arg6[%c0_17, %c0_18] : memref<1x128xf32, #tpu.memory_space<vmem>>, vector<1x128xf32>
      %22 = vector.broadcast %21 : vector<1x128xf32> to vector<8x128xf32>
      %23 = arith.addf %20, %22 : vector<8x128xf32>
      %24 = arith.negf %23 : vector<8x128xf32>
      %25 = math.exp %24 : vector<8x128xf32>
      %cst_19 = arith.constant 1.000000e+00 : f32
      %26 = vector.broadcast %cst_19 : f32 to vector<8x128xf32>
      %27 = arith.addf %26, %25 : vector<8x128xf32>
      %28 = arith.divf %26, %27 : vector<8x128xf32>
      %c0_20 = arith.constant 0 : index
      %c0_21 = arith.constant 0 : index
      %29 = vector.load %arg7[%c0_20, %c0_21] : memref<128x128xf32, #tpu.memory_space<vmem>>, vector<128x128xf32>
      %cst_22 = arith.constant dense<0.000000e+00> : vector<8x128xf32>
      %30 = tpu.matmul %28, %29, %cst_22 {dimension_numbers = #tpu.dot_dimension_numbers<[1], [0], [0], [1], [0, 0, 1, 1], [], []>} : vector<8x128xf32>, vector<128x128xf32>, vector<8x128xf32> -> vector<8x128xf32>
      %c0_23 = arith.constant 0 : index
      %c0_24 = arith.constant 0 : index
      %31 = vector.load %arg8[%c0_23, %c0_24] : memref<1x128xf32, #tpu.memory_space<vmem>>, vector<1x128xf32>
      %32 = vector.broadcast %31 : vector<1x128xf32> to vector<8x128xf32>
      %33 = arith.addf %30, %32 : vector<8x128xf32>
      %c0_25 = arith.constant 0 : index
      %c0_26 = arith.constant 0 : index
      %34 = vector.load %arg9[%c0_25, %c0_26] : memref<8x128xf32, #tpu.memory_space<vmem>>, vector<8x128xf32>
      tpu.vector_store %arg9[%c0_25, %c0_26], %33 {strides = array<i32>} : memref<8x128xf32, #tpu.memory_space<vmem>>, vector<8x128xf32>,
    } else {
    }
    return
  }
  func.func @transform_0(%arg0: i32, %arg1: i32) -> (i32, i32) {
    %c0_i32 = arith.constant 0 : i32
    return %arg0, %arg1 : i32, i32
  }
  func.func @transform_1(%arg0: i32, %arg1: i32) -> (i32, i32) {
    %c0_i32 = arith.constant 0 : i32
    %c0_i32_0 = arith.constant 0 : i32
    return %arg1, %c0_i32 : i32, i32
  }
  func.func @transform_2(%arg0: i32, %arg1: i32) -> (i32, i32) {
    %c0_i32 = arith.constant 0 : i32
    %c0_i32_0 = arith.constant 0 : i32
    %c0_i32_1 = arith.constant 0 : i32
    return %c0_i32, %c0_i32_0 : i32, i32
  }
  func.func @transform_3(%arg0: i32, %arg1: i32) -> (i32, i32) {
    %c0_i32 = arith.constant 0 : i32
    %c0_i32_0 = arith.constant 0 : i32
    %c0_i32_1 = arith.constant 0 : i32
    return %c0_i32, %c0_i32_0 : i32, i32
  }
  func.func @transform_4(%arg0: i32, %arg1: i32) -> (i32, i32) {
    %c0_i32 = arith.constant 0 : i32
    %c0_i32_0 = arith.constant 0 : i32
    %c0_i32_1 = arith.constant 0 : i32
    return %c0_i32, %c0_i32_0 : i32, i32
  }
  func.func @transform_5(%arg0: i32, %arg1: i32) -> (i32, i32) {
    %c0_i32 = arith.constant 0 : i32
    %c0_i32_0 = arith.constant 0 : i32
    %c0_i32_1 = arith.constant 0 : i32
    return %c0_i32, %c0_i32_0 : i32, i32
  }
  func.func @transform_6(%arg0: i32, %arg1: i32) -> (i32, i32) {
    %c0_i32 = arith.constant 0 : i32
    %c0_i32_0 = arith.constant 0 : i32
    %c0_i32_1 = arith.constant 0 : i32
    return %c0_i32, %c0_i32_0 : i32, i32
  }
  func.func @transform_7(%arg0: i32, %arg1: i32) -> (i32, i32) {
    %c0_i32 = arith.constant 0 : i32
    %c0_i32_0 = arith.constant 0 : i32
    return %arg0, %c0_i32 : i32, i32
  }
}

</mosaic_0001>

<bundles_post_ra>
// kernel: tpu_custom_call.1
= control target key start
LH: loop header
LB: loop body
LE: loop exit
PB: predicated region body
PF: predicated region fallthrough
CT: control target
= control target key end

     0   :  { %s4606_s0 = inlined_call_operand.hbm [shape: f32[8,10240], index: 0, kind: input, shape index: {}]   ;;  %s4607_s1 = inlined_call_operand.hbm [shape: bf16[10240,256], index: 1, kind: input, shape index: {}]   ;;  %s4608_s2 = inlined_call_operand.hbm [shape: f32[1,256], index: 2, kind: input, shape index: {}]   ;;  %s4609_s3 = inlined_call_operand.hbm [shape: f32[256,128], index: 3, kind: input, shape index: {}]   ;;  %s4610_s4 = inlined_call_operand.hbm [shape: f32[1,128], index: 4, kind: input, shape index: {}]   ;;  %s4611_s5 = inlined_call_operand.hbm [shape: f32[128,128], index: 5, kind: input, shape index: {}]   ;;  %s4612_s6 = inlined_call_operand.hbm [shape: f32[1,128], index: 6, kind: input, shape index: {}]   ;;  %s4613_s7 = inlined_call_operand.hbm [shape: f32[8,128], index: 7, kind: output, shape index: {}]  }
   0x1   :  { %4618 = sst [smem:[#allocation22_spill]] %s4608_s2 }
   0x2   :  { %4619 = sst [smem:[#allocation23_spill]] %s4609_s3 }
   0x3   :  { %12 = vsyncpa [#allocation4], 0 }
   0x4   :  { %14 = vsyncpa [#allocation4 + $0x1], 0 }
   0x5   :  { %15 = vsyncpa [#allocation7], 0 }
   0x6   :  { %17 = vsyncpa [#allocation7 + $0x1], 0 }
   0x7   :  { %18 = vsyncpa [#allocation10], 0 }
   0x8   :  { %19 = vsyncpa [#allocation13], 0 }
   0x9   :  { %20 = vsyncpa [#allocation5], 0  ;;  %s3993_s24 = smov 0   ;;  %s3995_s25 = smov 0  }
   0xa   :  { %s3997_s26 = smov 0   ;;  %s3999_s27 = smov 0  }
   0xb   :  { %s4001_s28 = smov 0   ;;  %s4003_s29 = smov 0  }
   0xc LB: > { %s4024_s30 = sadd.s32 4294967295, %s3937_s29   ;;  %p2696_p0 = scmp.ge.s32.totalorder %s3937_s29, 1  ;;  %s3937_s29 = sphi %s4003_s29, %s26_s29   ;;  %s3933_s28 = sphi %s4001_s28, %s4642_s28   ;;  %s3929_s27 = sphi %s3999_s27, %s4641_s27   ;;  %s3925_s26 = sphi %s3997_s26, %s4640_s26   ;;  %s3921_s25 = sphi %s3995_s25, %s4639_s25   ;;  %s3917_s24 = sphi %s3993_s24, %s4638_s24  }
   0xd   : > { %p4614_p1 = scmp.eq.s32.totalorder %s4024_s30, 0  ;;  %p228_p2 = scmp.lt.s32.totalorder %s3937_s29, 6 }
   0xe   : > { %s3939_s9 = smov [#allocation8]   ;;  %s3940_s11 = smov [#allocation9]  }
   0xf   : > { %p4029_p3 = pnand %p2696_p0, %p228_p2  ;;  %s241_s10 = sshll.u32 %s3939_s9, 4  ;;  %s242_s10 = int_to_ptr.vmem [resolvable:$true] %s241_s10 }
  0x10   : > { %s251_s12 = sshll.u32 %s3940_s11, 4  ;;  %s3941_s14 = smov [#allocation12]   ;;  %s4041_s12 = int_to_ptr.vmem [resolvable:$true] %s251_s12 }
  0x11   : > { %s4620_s8 = scalar_select %p4029_p3, 1, 0 }
  0x12   : > { %p3157_p4 = pneg %p4029_p3  ;;  %s4043_s15 = sshll.u32 %s3941_s14, 4  ;;  %s276_s15 = int_to_ptr.vmem [resolvable:$true] %s4043_s15 }
  0x13   : > { %s4622_s2 = sld [smem:[#allocation22_spill]] }
  0x14   : > { %p4037_p5 = pnand %p3157_p4, %p4614_p1 }
  0x16   : > { %p4053_p7 = pneg %p4037_p5 }
  0x19   : > { %s3641_s18 = scalar_lea.hbm %s4622_s2, 32 }
  0x1a   : > { %p3642_p6 = scmp.ne.s32.totalorder %s4622_s2, %s3641_s18  ;;  %p3648_p10 = scmp.lt.u32.totalorder %s3641_s18, %s4622_s2 }
  0x1c   : > { %p3644_p8 = pnand %p4053_p7, %p3642_p6 }
  0x1e   : > { %p3645_p9 = pneg %p3644_p8 }
  0x20   : > { %p3650_p11 = pnand %p3648_p10, %p3645_p9 }
  0x22   : > { %3653 = shalt.err (!%p3650_p11)
}
  0x23   : > { %s3654_s9 = scalar_lea.vmem %s242_s10, 32  ;;  %p3662_p2 = scmp.lt.s32.totalorder %s242_s10, %s242_s10 }
  0x24   : > { %p3655_p12 = scmp.ne.s32.totalorder %s242_s10, %s3654_s9  ;;  %p3663_p4 = scmp.lt.s32.totalorder %s3654_s9, %s3654_s9 }
  0x26   : > { %p3657_p13 = pnand %p3655_p12, %p4053_p7  ;;  %p3664_p1 = por %p3663_p4, %p3662_p2 }
  0x28   : > { %p3658_p0 = pneg %p3657_p13 }
  0x2a   : > { %p3665_p3 = pnand %p3664_p1, %p3658_p0 }
  0x2c   : > { %3668 = shalt.err (!%p3665_p3)
}
  0x2d   : > { %3160 = dma.hbm_to_vmem [thread:$0]  (!%p4037_p5), %s4622_s2, 32, %s242_s10, [#allocation7]  }
  0x2e   : > { %s4624_s3 = sld [smem:[#allocation23_spill]] }
  0x34   : > { %s3669_s18 = scalar_lea.hbm %s4624_s3, 4096 }
  0x35   : > { %p3670_p6 = scmp.ne.s32.totalorder %s4624_s3, %s3669_s18  ;;  %p3676_p1 = scmp.lt.u32.totalorder %s3669_s18, %s4624_s3 }
  0x37   : > { %p3672_p8 = pnand %p3670_p6, %p4053_p7 }
  0x39   : > { %p3673_p9 = pneg %p3672_p8 }
  0x3b   : > { %p3678_p3 = pnand %p3676_p1, %p3673_p9 }
  0x3d   : > { %3681 = shalt.err (!%p3678_p3)
}
  0x3e   : > { %s3682_s10 = scalar_lea.vmem %s4041_s12, 4096  ;;  %p3690_p13 = scmp.lt.s32.totalorder %s4041_s12, %s4041_s12 }
  0x3f   : > { %p3683_p10 = scmp.ne.s32.totalorder %s4041_s12, %s3682_s10  ;;  %p3691_p0 = scmp.lt.s32.totalorder %s3682_s10, %s3682_s10 }
  0x41   : > { %p3685_p11 = pnand %p3683_p10, %p4053_p7  ;;  %p3692_p2 = por %p3691_p0, %p3690_p13 }
  0x43   : > { %p3686_p12 = pneg %p3685_p11 }
  0x45   : > { %p3693_p4 = pnand %p3692_p2, %p3686_p12 }
  0x47   : > { %3696 = shalt.err (!%p3693_p4)
}
  0x48   : > { %s4616_s9 = smov 128   ;;  %s4617_s11 = smov 8  }
  0x49   : > { %3163 = dma.hbm_to_vmem [thread:$0]  (!%p4037_p5), %s4624_s3, 4096, %s4041_s12, [#allocation10], %s4616_s9, %s4616_s9, %s4617_s11  }
  0x4a   : > { %s3697_s19 = scalar_lea.hbm %s4611_s5, 2048 }
  0x4b   : > { %p3698_p6 = scmp.ne.s32.totalorder %s4611_s5, %s3697_s19  ;;  %p3704_p1 = scmp.lt.u32.totalorder %s3697_s19, %s4611_s5 }
  0x4d   : > { %p3700_p8 = pnand %p3698_p6, %p4053_p7 }
  0x4f   : > { %p3701_p9 = pneg %p3700_p8 }
  0x51   : > { %p3706_p3 = pnand %p3704_p1, %p3701_p9 }
  0x53   : > { %3709 = shalt.err (!%p3706_p3)
}
  0x54   : > { %s3710_s14 = scalar_lea.vmem %s276_s15, 2048  ;;  %p3718_p13 = scmp.lt.s32.totalorder %s276_s15, %s276_s15 }
  0x55   : > { %p3711_p10 = scmp.ne.s32.totalorder %s276_s15, %s3710_s14  ;;  %p3719_p0 = scmp.lt.s32.totalorder %s3710_s14, %s3710_s14 }
  0x57   : > { %p3713_p11 = pnand %p3711_p10, %p4053_p7  ;;  %p3720_p2 = por %p3719_p0, %p3718_p13 }
  0x59   : > { %p3714_p12 = pneg %p3713_p11 }
  0x5b   : > { %p3721_p4 = pnand %p3720_p2, %p3714_p12 }
  0x5d   : > { %3724 = shalt.err (!%p3721_p4)
}
  0x5e   : > { %3169 = dma.hbm_to_vmem [thread:$0]  (!%p4037_p5), %s4611_s5, 2048, %s276_s15, [#allocation13], %s4616_s9, %s4616_s9, %s4617_s11  }
  0x5f   : > { %s3944_s17 = smov [#allocation11]   ;;  %s3945_s19 = smov [#allocation14]  }
  0x60   : > { %s265_s18 = sshll.u32 %s3944_s17, 4  ;;  %s289_s20 = sshll.u32 %s3945_s19, 4  ;;  %s266_s18 = int_to_ptr.vmem [resolvable:$true] %s265_s18  ;;  %s290_s20 = int_to_ptr.vmem [resolvable:$true] %s289_s20 }
  0x61   : > { %s3725_s10 = scalar_lea.hbm %s4610_s4, 16 }
  0x62   : > { %p3726_p6 = scmp.ne.s32.totalorder %s4610_s4, %s3725_s10  ;;  %p3732_p1 = scmp.lt.u32.totalorder %s3725_s10, %s4610_s4 }
  0x64   : > { %p3728_p8 = pnand %p3726_p6, %p4053_p7 }
  0x66   : > { %p3729_p9 = pneg %p3728_p8 }
  0x68   : > { %p3734_p3 = pnand %p3732_p1, %p3729_p9 }
  0x6a   : > { %3737 = shalt.err (!%p3734_p3)
}
  0x6b   : > { %s3738_s15 = scalar_lea.vmem %s266_s18, 16  ;;  %s3745_s16 = scalar_lea.vmem %s266_s18, 32 }
  0x6c   : > { %p3739_p10 = scmp.ne.s32.totalorder %s266_s18, %s3738_s15  ;;  %p3746_p13 = scmp.lt.s32.totalorder %s266_s18, %s266_s18 }
  0x6d   : > { %p3747_p0 = scmp.lt.s32.totalorder %s3745_s16, %s3738_s15 }
  0x6e   : > { %p3741_p11 = pnand %p3739_p10, %p4053_p7 }
  0x6f   : > { %p3748_p2 = por %p3747_p0, %p3746_p13 }
  0x70   : > { %p3742_p12 = pneg %p3741_p11 }
  0x72   : > { %p3749_p4 = pnand %p3748_p2, %p3742_p12 }
  0x74   : > { %3752 = shalt.err (!%p3749_p4)
}
  0x75   : > { %3166 = dma.hbm_to_vmem [thread:$0]  (!%p4037_p5), %s4610_s4, 16, %s266_s18, [#allocation10]  }
  0x76   : > { %s3753_s22 = scalar_lea.hbm %s4612_s6, 16 }
  0x77   : > { %p3754_p6 = scmp.ne.s32.totalorder %s4612_s6, %s3753_s22  ;;  %p3760_p1 = scmp.lt.u32.totalorder %s3753_s22, %s4612_s6 }
  0x79   : > { %p3756_p8 = pnand %p3754_p6, %p4053_p7 }
  0x7b   : > { %p3757_p9 = pneg %p3756_p8 }
  0x7d   : > { %p3762_p3 = pnand %p3760_p1, %p3757_p9 }
  0x7f   : > { %3765 = shalt.err (!%p3762_p3)
}
  0x80   : > { %s3766_s15 = scalar_lea.vmem %s290_s20, 16  ;;  %s3773_s18 = scalar_lea.vmem %s290_s20, 32 }
  0x81   : > { %p3767_p10 = scmp.ne.s32.totalorder %s290_s20, %s3766_s15  ;;  %p3774_p13 = scmp.lt.s32.totalorder %s290_s20, %s290_s20 }
  0x82   : > { %p3775_p0 = scmp.lt.s32.totalorder %s3773_s18, %s3766_s15 }
  0x83   : > { %p3769_p11 = pnand %p3767_p10, %p4053_p7 }
  0x84   : > { %p3776_p2 = por %p3775_p0, %p3774_p13 }
  0x85   : > { %p3770_p12 = pneg %p3769_p11 }
  0x87   : > { %p3777_p4 = pnand %p3776_p2, %p3770_p12 }
  0x89   : > { %3780 = shalt.err (!%p3777_p4)
}
  0x8a   : > { %3172 = dma.hbm_to_vmem [thread:$0]  (!%p4037_p5), %s4612_s6, 16, %s290_s20, [#allocation13]  }
  0x8b   : > { %s35_s21 = sadd.s32 1, %s3933_s28  ;;  %s47_s13 = sadd.s32 1, %s3925_s26 }
  0x8c   : > { %p36_p7 = scmp.ge.s32.totalorder %s35_s21, 5  ;;  %p54_p6 = scmp.ne.s32.totalorder %s3925_s26, %s3921_s25 }
  0x8d   : > { %p55_p8 = scmp.eq.s32.totalorder %s3937_s29, 0  ;;  %p60_p1 = scmp.ne.s32.totalorder %s3921_s25, %s3917_s24 }
  0x8e   : > { %s4644_s21 = smov (%p36_p7, %s35_s21), 0  ;;  %p3185_p3 = scmp.lt.s32.totalorder %s3937_s29, 5 }
  0x8f   : > { %p4160_p9 = por %p55_p8, %p54_p6  ;;  %s43_s3 = ssub.s32 %s3933_s28, %s4644_s21 }
  0x90   : > { %p45_p10 = scmp.eq.s32.totalorder %s43_s3, 0  ;;  %p4626_p11 = scmp.eq.s32.totalorder %s4024_s30, 0 }
  0x91   : > { %s4176_s19 = sand.u32 1, %s3925_s26   ;;  %s2983_s22 = sshll.u32 %s3933_s28, 11 }
  0x92   : > { %p4171_p12 = por %p4626_p11, %p60_p1  ;;  %s2703_s10 = sshll.u32 %s4176_s19, 7 }
  0x93   : > { %s4180_s23 = scalar_select %p45_p10, %s3925_s26, %s47_s13  }
  0x94   : > { %s4186_s24 = scalar_lea.hbm %s4606_s0, %s2983_s22  ;;  %s304_s15 = scalar_lea.vmem [#allocation3], %s2703_s10 }
  0x95   : > { %s314_s18 = sshll.u32 %s304_s15, 4  ;;  %p4190_p5 = pnand %p3185_p3, %p4160_p9  ;;  %s4194_s18 = int_to_ptr.vmem [resolvable:$true] %s314_s18 }
  0x96   : > { %s2706_s2 = sshll.u32 %s4176_s19, 11  ;;  %s301_s13 = scalar_lea.sflag [#allocation4], %s4176_s19 }
  0x97   : > { %s3781_s3 = scalar_lea.hbm %s4186_s24, 2048  ;;  %p3783_p0 = pneg %p4190_p5 }
  0x98   : > { %p3782_p13 = scmp.ne.s32.totalorder %s4186_s24, %s3781_s3  ;;  %s3786_s10 = scalar_lea.hbm %s4606_s0, 10240 }
  0x99   : > { %p3787_p7 = scmp.lt.u32.totalorder %s4186_s24, %s4606_s0  ;;  %p3788_p6 = scmp.lt.u32.totalorder %s3786_s10, %s3781_s3 }
  0x9a   : > { %p3784_p2 = pnand %p3783_p0, %p3782_p13  ;;  %p3790_p9 = scmp.lt.u32.totalorder %s3781_s3, %s4186_s24 }
  0x9b   : > { %p3789_p8 = por %p3788_p6, %p3787_p7 }
  0x9c   : > { %p3785_p4 = pneg %p3784_p2 }
  0x9d   : > { %p3791_p1 = por %p3790_p9, %p3789_p8 }
  0x9f   : > { %p3792_p3 = pnand %p3791_p1, %p3785_p4 }
  0xa1   : > { %3795 = shalt.err (!%p3792_p3)
}
  0xa2   : > { %s3796_s15 = scalar_lea.vmem %s4194_s18, 2048  ;;  %s3946_s22 = smov [#allocation3]  }
  0xa3   : > { %p3797_p10 = scmp.ne.s32.totalorder %s4194_s18, %s3796_s15  ;;  %s3801_s17 = sshll.u32 %s3946_s22, 4  ;;  %s3802_s17 = int_to_ptr.vmem [resolvable:$false] %s3801_s17 }
  0xa4   : > { %s3803_s14 = scalar_lea.vmem %s3802_s17, 4096  ;;  %p3804_p2 = scmp.lt.s32.totalorder %s4194_s18, %s3802_s17 }
  0xa5   : > { %p3799_p11 = pnand %p3797_p10, %p3783_p0  ;;  %p3805_p7 = scmp.lt.s32.totalorder %s3803_s14, %s3796_s15 }
  0xa7   : > { %p3800_p13 = pneg %p3799_p11  ;;  %p3806_p6 = por %p3805_p7, %p3804_p2 }
  0xa9   : > { %p3807_p8 = pnand %p3806_p6, %p3800_p13 }
  0xab   : > { %3810 = shalt.err (!%p3807_p8)
}
  0xac   : > { %3176 = dma.hbm_to_vmem [thread:$0]  (!%p4190_p5), %s4186_s24, 2048, %s4194_s18, %s301_s13  }
  0xad   : > { %s2985_s3 = sshll.u32 %s3933_s28, 15  ;;  %s325_s10 = scalar_lea.vmem [#allocation6], %s2706_s2 }
  0xae   : > { %s333_s12 = sshll.u32 %s325_s10, 4  ;;  %s321_s22 = sand.u32 1, %s3937_s29   ;;  %s4226_s12 = int_to_ptr.vmem [resolvable:$true] %s333_s12 }
  0xaf   : > { %s4232_s14 = scalar_lea.hbm %s4607_s1, %s2985_s3  ;;  %s4234_s9 = scalar_lea.sflag [#allocation7], %s321_s22 }
  0xb0   : > { %s3811_s11 = scalar_lea.hbm %s4232_s14, 32768  ;;  %s3816_s18 = scalar_lea.hbm %s4607_s1, 163840 }
  0xb1   : > { %p3812_p4 = scmp.ne.s32.totalorder %s4232_s14, %s3811_s11  ;;  %p3817_p3 = scmp.lt.u32.totalorder %s4232_s14, %s4607_s1 }
  0xb2   : > { %p3818_p10 = scmp.lt.u32.totalorder %s3816_s18, %s3811_s11  ;;  %p3820_p13 = scmp.lt.u32.totalorder %s3811_s11, %s4232_s14 }
  0xb3   : > { %p3814_p9 = pnand %p3812_p4, %p3783_p0 }
  0xb4   : > { %p3819_p11 = por %p3818_p10, %p3817_p3 }
  0xb5   : > { %p3815_p1 = pneg %p3814_p9 }
  0xb6   : > { %p3821_p2 = por %p3820_p13, %p3819_p11 }
  0xb8   : > { %p3822_p7 = pnand %p3821_p2, %p3815_p1 }
  0xba   : > { %3825 = shalt.err (!%p3822_p7)
}
  0xbb   : > { %s3826_s3 = scalar_lea.vmem %s4226_s12, 32768  ;;  %s3947_s10 = smov [#allocation6]  }
  0xbc   : > { %p3827_p6 = scmp.ne.s32.totalorder %s4226_s12, %s3826_s3  ;;  %s3831_s22 = sshll.u32 %s3947_s10, 4  ;;  %s3832_s22 = int_to_ptr.vmem [resolvable:$false] %s3831_s22 }
  0xbd   : > { %s3833_s15 = scalar_lea.vmem %s3832_s22, 65536  ;;  %p3834_p9 = scmp.lt.s32.totalorder %s4226_s12, %s3832_s22 }
  0xbe   : > { %p3829_p8 = pnand %p3827_p6, %p3783_p0  ;;  %p3835_p3 = scmp.lt.s32.totalorder %s3833_s15, %s3826_s3 }
  0xc0   : > { %p3830_p4 = pneg %p3829_p8  ;;  %p3836_p10 = por %p3835_p3, %p3834_p9 }
  0xc2   : > { %p3837_p11 = pnand %p3836_p10, %p3830_p4 }
  0xc4   : > { %3840 = shalt.err (!%p3837_p11)
}
  0xc5   : > { %s4629_s11 = smov 8   ;;  %s4630_s17 = smov 128  }
  0xc6   : > { %3179 = dma.hbm_to_vmem [thread:$0]  (!%p4190_p5), %s4232_s14, 32768, %s4226_s12, %s4234_s9, %s4630_s17, %s4630_s17, %s4629_s11  }
  0xc7   : > { %p4631_p0 = scmp.ne.s32.totalorder %s4620_s8, 0 }
  0xc8   : > { %s347_s19 = sand.u32 (!%p4631_p0), 1, %s3921_s25  }
  0xc9   : > { %345 = sbr.rel (%p4631_p0) target bundleno = 1203 (0x4b3), region = 48  ;;  %s2711_s24 = sshll.u32 (!%p4631_p0), %s347_s19, 7 }
  0xca   : > { %s348_s18 = scalar_lea.sflag (!%p4631_p0), [#allocation4], %s347_s19  ;;  %s4266_s2 = scalar_lea.vmem (!%p4631_p0), [#allocation3], %s2711_s24 }
  0xd0   : > { %3892 = dma.done.wait (%p4171_p12), %s348_s18, 2048  }
  0xd1   : > { %3894 = vsyncadd (%p4171_p12), %s348_s18, 4294965248  ;;  %s356_s16 = sand.u32 1, %s4024_s30   ;;  %s2712_s13 = sshll.u32 %s347_s19, 11 }
  0xd2   : > { %s357_s9 = scalar_lea.sflag [#allocation7], %s356_s16  ;;  %s4273_s12 = scalar_lea.vmem [#allocation6], %s2712_s13 }
  0xd3   : > { %3896 = dma.done.wait (%p4171_p12), %s357_s9, 32768  }
  0xd4   : > { %3898 = vsyncadd (%p4171_p12), %s357_s9, 4294934528  ;;  %p4632_p5 = scmp.eq.s32.totalorder %s4024_s30, 0 }
  0xd6   : > { %3900 = dma.done.wait (%p4632_p5), [#allocation7], 32   ;;  %p4633_p1 = pmov %p4632_p5 }
  0xd8   : > { %3902 = vsyncadd (%p4633_p1), [#allocation7], 4294967264  ;;  %p4634_p13 = pmov %p4633_p1 }
  0xd9   : > { %p4635_p2 = pmov %p4633_p1 }
  0xda   : > { %3904 = dma.done.wait (%p4634_p13), [#allocation10], 4112  }
  0xdb   : > { %3906 = vsyncadd (%p4635_p2), [#allocation10], 4294963184  ;;  %p4636_p7 = pmov %p4633_p1 }
  0xdc   : > { %p4637_p6 = pmov %p4633_p1 }
  0xdd   : > { %3908 = dma.done.wait (%p4636_p7), [#allocation13], 2064  }
  0xde   : > { %3910 = vsyncadd (%p4637_p6), [#allocation13], 4294965232  ;;  %p2718_p12 = scmp.ne.s32.totalorder %s3929_s27, 0 }
  0xdf   : > { %v3948_v0 = vmov (!%p2718_p12), 0.0  }
  0xe0   : > { %416 = sbr.rel (%p2718_p12) target bundleno = 231 (0xe7), region = 80  ;;  %417 = vst [vmem:[#allocation2] sm:$0xff] (!%p2718_p12), %v3948_v0  ;;  %418 = vst [vmem:[#allocation2 + $0x8] sm:$0xff] (!%p2718_p12), %v3948_v0 }
  0xe7 PF: > { %v3253_v1 = vld [vmem:[%s4273_s12 + $0x4] ss:$8 sps:$4 sm:$0xff]   ;;  %v3257_v3 = vld [vmem:[%s4273_s12] ss:$8 sps:$4 sm:$0xff]   ;;  %v3259_v5 = vld [vmem:[%s4273_s12 + $0x14] ss:$8 sps:$4 sm:$0xff]  }
  0xe8   : > { %v3255_v2 = vld [vmem:[%s4273_s12 + $0x104] ss:$8 sps:$4 sm:$0xff]   ;;  %1989 = vmatprep.subr.bf16.mxu0 %v3253_v1  ;;  %v3258_v4 = vld [vmem:[%s4273_s12 + $0x100] ss:$8 sps:$4 sm:$0xff]   ;;  %v3261_v6 = vld [vmem:[%s4273_s12 + $0x114] ss:$8 sps:$4 sm:$0xff]  }
  0xe9   : > { %2030 = vmatprep.subr.bf16.mxu1 %v3255_v2  ;;  %1990 = vmatpush1.bf16.msra.mxu0 %v3257_v3  ;;  %v3263_v7 = vld [vmem:[%s4273_s12 + $0x10] ss:$8 sps:$4 sm:$0xff]   ;;  %v3265_v9 = vld [vmem:[%s4273_s12 + $0x24] ss:$8 sps:$4 sm:$0xff]   ;;  %v3269_v11 = vld [vmem:[%s4273_s12 + $0x20] ss:$8 sps:$4 sm:$0xff]  }
  0xea   : > { %2031 = vmatpush1.bf16.msra.mxu1 %v3258_v4  ;;  %1991 = vmatprep.subr.bf16.mxu0 %v3259_v5  ;;  %v3264_v8 = vld [vmem:[%s4273_s12 + $0x110] ss:$8 sps:$4 sm:$0xff]   ;;  %v3267_v10 = vld [vmem:[%s4273_s12 + $0x124] ss:$8 sps:$4 sm:$0xff]   ;;  %v3270_v12 = vld [vmem:[%s4273_s12 + $0x120] ss:$8 sps:$4 sm:$0xff]  }
  0xeb   : > { %2032 = vmatprep.subr.bf16.mxu1 %v3261_v6  ;;  %v3271_v13 = vld [vmem:[%s4273_s12 + $0x34] ss:$8 sps:$4 sm:$0xff]   ;;  %v3275_v15 = vld [vmem:[%s4273_s12 + $0x30] ss:$8 sps:$4 sm:$0xff]   ;;  %v3277_v17 = vld [vmem:[%s4273_s12 + $0x44] ss:$8 sps:$4 sm:$0xff]  }
  0xec   : > { %v3273_v14 = vld [vmem:[%s4273_s12 + $0x134] ss:$8 sps:$4 sm:$0xff]   ;;  %v3276_v16 = vld [vmem:[%s4273_s12 + $0x130] ss:$8 sps:$4 sm:$0xff]   ;;  %v3279_v18 = vld [vmem:[%s4273_s12 + $0x144] ss:$8 sps:$4 sm:$0xff]  }
  0xed   : > { %1992 = vmatpush1.bf16.msra.mxu0 %v3263_v7  ;;  %v3281_v19 = vld [vmem:[%s4273_s12 + $0x40] ss:$8 sps:$4 sm:$0xff]   ;;  %v3283_v21 = vld [vmem:[%s4273_s12 + $0x54] ss:$8 sps:$4 sm:$0xff]   ;;  %v3287_v23 = vld [vmem:[%s4273_s12 + $0x50] ss:$8 sps:$4 sm:$0xff]  }
  0xee   : > { %2033 = vmatpush1.bf16.msra.mxu1 %v3264_v8  ;;  %1993 = vmatprep.subr.bf16.mxu0 %v3265_v9  ;;  %v3282_v20 = vld [vmem:[%s4273_s12 + $0x140] ss:$8 sps:$4 sm:$0xff]   ;;  %v3285_v22 = vld [vmem:[%s4273_s12 + $0x154] ss:$8 sps:$4 sm:$0xff]   ;;  %v3288_v24 = vld [vmem:[%s4273_s12 + $0x150] ss:$8 sps:$4 sm:$0xff]  }
  0xef   : > { %2034 = vmatprep.subr.bf16.mxu1 %v3267_v10  ;;  %v3289_v25 = vld [vmem:[%s4273_s12 + $0x64] ss:$8 sps:$4 sm:$0xff]   ;;  %v3293_v27 = vld [vmem:[%s4273_s12 + $0x60] ss:$8 sps:$4 sm:$0xff]   ;;  %v3295_v29 = vld [vmem:[%s4273_s12 + $0x74] ss:$8 sps:$4 sm:$0xff]  }
  0xf0   : > { %v3291_v26 = vld [vmem:[%s4273_s12 + $0x164] ss:$8 sps:$4 sm:$0xff]   ;;  %v3294_v28 = vld [vmem:[%s4273_s12 + $0x160] ss:$8 sps:$4 sm:$0xff]   ;;  %v3297_v30 = vld [vmem:[%s4273_s12 + $0x174] ss:$8 sps:$4 sm:$0xff]  }
  0xf1   : > { %1994 = vmatpush1.bf16.msra.mxu0 %v3269_v11  ;;  %v3299_v31 = vld [vmem:[%s4273_s12 + $0x70] ss:$8 sps:$4 sm:$0xff]   ;;  %v3301_v33 = vld [vmem:[%s4273_s12 + $0x84] ss:$8 sps:$4 sm:$0xff]   ;;  %v3305_v35 = vld [vmem:[%s4273_s12 + $0x80] ss:$8 sps:$4 sm:$0xff]  }
  0xf2   : > { %2035 = vmatpush1.bf16.msra.mxu1 %v3270_v12  ;;  %1995 = vmatprep.subr.bf16.mxu0 %v3271_v13  ;;  %v3300_v32 = vld [vmem:[%s4273_s12 + $0x170] ss:$8 sps:$4 sm:$0xff]   ;;  %v3303_v34 = vld [vmem:[%s4273_s12 + $0x184] ss:$8 sps:$4 sm:$0xff]   ;;  %v3306_v36 = vld [vmem:[%s4273_s12 + $0x180] ss:$8 sps:$4 sm:$0xff]  }
  0xf3   : > { %2036 = vmatprep.subr.bf16.mxu1 %v3273_v14  ;;  %v3307_v37 = vld [vmem:[%s4273_s12 + $0x94] ss:$8 sps:$4 sm:$0xff]   ;;  %v3311_v39 = vld [vmem:[%s4273_s12 + $0x90] ss:$8 sps:$4 sm:$0xff]   ;;  %v3313_v41 = vld [vmem:[%s4273_s12 + $0xa4] ss:$8 sps:$4 sm:$0xff]  }
  0xf4   : > { %v3309_v38 = vld [vmem:[%s4273_s12 + $0x194] ss:$8 sps:$4 sm:$0xff]   ;;  %v3312_v40 = vld [vmem:[%s4273_s12 + $0x190] ss:$8 sps:$4 sm:$0xff]   ;;  %v3315_v42 = vld [vmem:[%s4273_s12 + $0x1a4] ss:$8 sps:$4 sm:$0xff]  }
  0xf5   : > { %1996 = vmatpush1.bf16.msra.mxu0 %v3275_v15  ;;  %v3317_v43 = vld [vmem:[%s4273_s12 + $0xa0] ss:$8 sps:$4 sm:$0xff]   ;;  %v3319_v45 = vld [vmem:[%s4273_s12 + $0xb4] ss:$8 sps:$4 sm:$0xff]   ;;  %v3323_v48 = vld [vmem:[%s4273_s12 + $0xb0] ss:$8 sps:$4 sm:$0xff]  }
  0xf6   : > { %2037 = vmatpush1.bf16.msra.mxu1 %v3276_v16  ;;  %1997 = vmatprep.subr.bf16.mxu0 %v3277_v17  ;;  %v3318_v44 = vld [vmem:[%s4273_s12 + $0x1a0] ss:$8 sps:$4 sm:$0xff]   ;;  %v3321_v46 = vld [vmem:[%s4273_s12 + $0x1b4] ss:$8 sps:$4 sm:$0xff]   ;;  %v3324_v49 = vld [vmem:[%s4273_s12 + $0x1b0] ss:$8 sps:$4 sm:$0xff]  }
  0xf7   : > { %2038 = vmatprep.subr.bf16.mxu1 %v3279_v18  ;;  %v422_v47 = vld [vmem:[%s4266_s2 + $0x8] sm:$0xff]  ;;  %v424_v51 = vld [vmem:[%s4266_s2 + $0x18] sm:$0xff]  ;;  %v421_v5 = vld [vmem:[%s4266_s2] sm:$0xff]  ;;  %p2975_p8 = scmp.ne.s32.totalorder %s3929_s27, 4 }
  0xf8   : > { %v438_v50 = vpack.c.bf16 %v422_v47, %v422_v47  ;;  %v3325_v52 = vld [vmem:[%s4273_s12 + $0xc4] ss:$8 sps:$4 sm:$0xff]   ;;  %v440_v53 = vpack.c.bf16 %v424_v51, %v424_v51  ;;  %v3329_v55 = vld [vmem:[%s4273_s12 + $0xc0] ss:$8 sps:$4 sm:$0xff]   ;;  %v3331_v57 = vld [vmem:[%s4273_s12 + $0xd4] ss:$8 sps:$4 sm:$0xff]   ;;  %v437_v9 = vpack.c.bf16 %v421_v5, %v421_v5 }
  0xf9   : > { %1998 = vmatpush1.bf16.msra.mxu0 %v3281_v19  ;;  %v3327_v54 = vld [vmem:[%s4273_s12 + $0x1c4] ss:$8 sps:$4 sm:$0xff]   ;;  %v3330_v56 = vld [vmem:[%s4273_s12 + $0x1c0] ss:$8 sps:$4 sm:$0xff]   ;;  %v3333_v58 = vld [vmem:[%s4273_s12 + $0x1d4] ss:$8 sps:$4 sm:$0xff]  }
  0xfa   : > { %2039 = vmatpush1.bf16.msra.mxu1 %v3282_v20  ;;  %1999 = vmatprep.subr.bf16.mxu0 %v3283_v21  ;;  %v3335_v59 = vld [vmem:[%s4273_s12 + $0xd0] ss:$8 sps:$4 sm:$0xff]   ;;  %v3337_v61 = vld [vmem:[%s4273_s12 + $0xe4] ss:$8 sps:$4 sm:$0xff]   ;;  %v3341_v63 = vld [vmem:[%s4273_s12 + $0xe0] ss:$8 sps:$4 sm:$0xff]  }
  0xfb   : > { %2040 = vmatprep.subr.bf16.mxu1 %v3285_v22  ;;  %2021 = vmatprep.mubr.bf16.mxu0 %v438_v50  ;;  %v3336_v60 = vld [vmem:[%s4273_s12 + $0x1d0] ss:$8 sps:$4 sm:$0xff]   ;;  %v3339_v62 = vld [vmem:[%s4273_s12 + $0x1e4] ss:$8 sps:$4 sm:$0xff]   ;;  %v3342_v0 = vld [vmem:[%s4273_s12 + $0x1e0] ss:$8 sps:$4 sm:$0xff]  }
  0xfc   : > { %2062 = vmatprep.mubr.bf16.mxu1 %v440_v53  ;;  %v3343_v1 = vld [vmem:[%s4273_s12 + $0xf4] ss:$8 sps:$4 sm:$0xff]   ;;  %v3347_v3 = vld [vmem:[%s4273_s12 + $0xf0] ss:$8 sps:$4 sm:$0xff]   ;;  %v3351_v7 = vld [vmem:[%s4273_s12 + $0x204] ss:$8 sps:$4 sm:$0xff]  }
  0xfd   : > { %2000 = vmatpush1.bf16.msra.mxu0 %v3287_v23  ;;  %v3345_v2 = vld [vmem:[%s4273_s12 + $0x1f4] ss:$8 sps:$4 sm:$0xff]   ;;  %v3348_v4 = vld [vmem:[%s4273_s12 + $0x1f0] ss:$8 sps:$4 sm:$0xff]   ;;  %v3354_v8 = vld [vmem:[%s4273_s12 + $0x304] ss:$8 sps:$4 sm:$0xff]  }
  0xfe   : > { %2041 = vmatpush1.bf16.msra.mxu1 %v3288_v24  ;;  %2001 = vmatprep.subr.bf16.mxu0 %v3289_v25  ;;  %v423_v6 = vld [vmem:[%s4266_s2 + $0x10] sm:$0xff]  ;;  %v3349_v11 = vld [vmem:[%s4273_s12 + $0x200] ss:$8 sps:$4 sm:$0xff]   ;;  %v3363_v17 = vld [vmem:[%s4273_s12 + $0x224] ss:$8 sps:$4 sm:$0xff]   ;;  %vm3950_vm0 = vmmov (!%p2975_p8), 0  }
  0xff   : > { %2042 = vmatprep.subr.bf16.mxu1 %v3291_v26  ;;  %v439_v10 = vpack.c.bf16 %v423_v6, %v423_v6  ;;  %v3352_v12 = vld [vmem:[%s4273_s12 + $0x300] ss:$8 sps:$4 sm:$0xff]   ;;  %v3357_v13 = vld [vmem:[%s4273_s12 + $0x214] ss:$8 sps:$4 sm:$0xff]   ;;  %v3355_v15 = vld [vmem:[%s4273_s12 + $0x210] ss:$8 sps:$4 sm:$0xff]  }
 0x100   : > { %v3360_v14 = vld [vmem:[%s4273_s12 + $0x314] ss:$8 sps:$4 sm:$0xff]   ;;  %v3358_v16 = vld [vmem:[%s4273_s12 + $0x310] ss:$8 sps:$4 sm:$0xff]   ;;  %v3366_v18 = vld [vmem:[%s4273_s12 + $0x324] ss:$8 sps:$4 sm:$0xff]  }
 0x101   : > { %2002 = vmatpush1.bf16.msra.mxu0 %v3293_v27  ;;  %v3361_v19 = vld [vmem:[%s4273_s12 + $0x220] ss:$8 sps:$4 sm:$0xff]   ;;  %v3369_v21 = vld [vmem:[%s4273_s12 + $0x234] ss:$8 sps:$4 sm:$0xff]   ;;  %v3367_v23 = vld [vmem:[%s4273_s12 + $0x230] ss:$8 sps:$4 sm:$0xff]  }
 0x102   : > { %2043 = vmatpush1.bf16.msra.mxu1 %v3294_v28  ;;  %2003 = vmatprep.subr.bf16.mxu0 %v3295_v29  ;;  %v3364_v20 = vld [vmem:[%s4273_s12 + $0x320] ss:$8 sps:$4 sm:$0xff]   ;;  %v3372_v22 = vld [vmem:[%s4273_s12 + $0x334] ss:$8 sps:$4 sm:$0xff]   ;;  %v3370_v24 = vld [vmem:[%s4273_s12 + $0x330] ss:$8 sps:$4 sm:$0xff]  }
 0x103   : > { %2044 = vmatprep.subr.bf16.mxu1 %v3297_v30  ;;  %v3375_v25 = vld [vmem:[%s4273_s12 + $0x244] ss:$8 sps:$4 sm:$0xff]   ;;  %v3373_v27 = vld [vmem:[%s4273_s12 + $0x240] ss:$8 sps:$4 sm:$0xff]   ;;  %v3381_v29 = vld [vmem:[%s4273_s12 + $0x254] ss:$8 sps:$4 sm:$0xff]  }
 0x104   : > { %v3378_v26 = vld [vmem:[%s4273_s12 + $0x344] ss:$8 sps:$4 sm:$0xff]   ;;  %v3376_v28 = vld [vmem:[%s4273_s12 + $0x340] ss:$8 sps:$4 sm:$0xff]   ;;  %v3384_v30 = vld [vmem:[%s4273_s12 + $0x354] ss:$8 sps:$4 sm:$0xff]  }
 0x105   : > { %2004 = vmatpush1.bf16.msra.mxu0 %v3299_v31  ;;  %v3379_v31 = vld [vmem:[%s4273_s12 + $0x250] ss:$8 sps:$4 sm:$0xff]   ;;  %v3397_v47 = vld [vmem:[%s4273_s12 + $0x280] ss:$8 sps:$4 sm:$0xff]   ;;  %v3408_v50 = vld [vmem:[%s4273_s12 + $0x394] ss:$8 sps:$4 sm:$0xff]  }
 0x106   : > { %2045 = vmatpush1.bf16.msra.mxu1 %v3300_v32  ;;  %2005 = vmatprep.subr.bf16.mxu0 %v3301_v33  ;;  %v3382_v32 = vld [vmem:[%s4273_s12 + $0x350] ss:$8 sps:$4 sm:$0xff]   ;;  %v3387_v33 = vld [vmem:[%s4273_s12 + $0x264] ss:$8 sps:$4 sm:$0xff]  }
 0x107   : > { %2046 = vmatprep.subr.bf16.mxu1 %v3303_v34  ;;  %v3390_v34 = vld [vmem:[%s4273_s12 + $0x364] ss:$8 sps:$4 sm:$0xff]   ;;  %v3403_v51 = vld [vmem:[%s4273_s12 + $0x290] ss:$8 sps:$4 sm:$0xff]  }
 0x108   : > { %v3411_v53 = vld [vmem:[%s4273_s12 + $0x2a4] ss:$8 sps:$4 sm:$0xff]  }
 0x109   : > { %2006 = vmatpush1.bf16.msra.mxu0 %v3305_v35  ;;  %v426_v35 = vld [vmem:[%s4266_s2 + $0x28] sm:$0xff] }
 0x10a   : > { %2047 = vmatpush1.bf16.msra.mxu1 %v3306_v36  ;;  %2007 = vmatprep.subr.bf16.mxu0 %v3307_v37  ;;  %v3385_v36 = vld [vmem:[%s4273_s12 + $0x260] ss:$8 sps:$4 sm:$0xff]   ;;  %v3435_v5 = vld [vmem:[%s4273_s12 + $0x2e4] ss:$8 sps:$4 sm:$0xff]  }
 0x10b   : > { %2048 = vmatprep.subr.bf16.mxu1 %v3309_v38  ;;  %v3388_v37 = vld [vmem:[%s4273_s12 + $0x360] ss:$8 sps:$4 sm:$0xff]   ;;  %v442_v38 = vpack.c.bf16 %v426_v35, %v426_v35  ;;  %v3438_v6 = vld [vmem:[%s4273_s12 + $0x3e4] ss:$8 sps:$4 sm:$0xff]   ;;  %v3463_v35 = vld [vmem:[%s4273_s12 + $0x430] ss:$8 sps:$4 sm:$0xff]  }
 0x10d   : > { %2008 = vmatpush1.bf16.msra.mxu0 %v3311_v39  ;;  %v428_v39 = vld [vmem:[%s4266_s2 + $0x38] sm:$0xff] }
 0x10e   : > { %2049 = vmatpush1.bf16.msra.mxu1 %v3312_v40  ;;  %2009 = vmatprep.subr.bf16.mxu0 %v3313_v41  ;;  %v3393_v40 = vld [vmem:[%s4273_s12 + $0x274] ss:$8 sps:$4 sm:$0xff]   ;;  %v444_v41 = vpack.c.bf16 %v428_v39, %v428_v39  ;;  %v3469_v39 = vld [vmem:[%s4273_s12 + $0x440] ss:$8 sps:$4 sm:$0xff]  }
 0x10f   : > { %2050 = vmatprep.subr.bf16.mxu1 %v3315_v42  ;;  %v3396_v42 = vld [vmem:[%s4273_s12 + $0x374] ss:$8 sps:$4 sm:$0xff]  }
 0x111   : > { %2010 = vmatpush1.bf16.msra.mxu0 %v3317_v43  ;;  %v3391_v43 = vld [vmem:[%s4273_s12 + $0x270] ss:$8 sps:$4 sm:$0xff]  }
 0x112   : > { %2051 = vmatpush1.bf16.msra.mxu1 %v3318_v44  ;;  %2011 = vmatprep.subr.bf16.mxu0 %v3319_v45  ;;  %v3394_v44 = vld [vmem:[%s4273_s12 + $0x370] ss:$8 sps:$4 sm:$0xff]   ;;  %v3399_v45 = vld [vmem:[%s4273_s12 + $0x284] ss:$8 sps:$4 sm:$0xff]  }
 0x113   : > { %2052 = vmatprep.subr.bf16.mxu1 %v3321_v46  ;;  %v3402_v46 = vld [vmem:[%s4273_s12 + $0x384] ss:$8 sps:$4 sm:$0xff]  }
 0x115   : > { %2012 = vmatpush1.bf16.msra.mxu0 %v3323_v48  ;;  %v3400_v48 = vld [vmem:[%s4273_s12 + $0x380] ss:$8 sps:$4 sm:$0xff]  }
 0x116   : > { %2053 = vmatpush1.bf16.msra.mxu1 %v3324_v49  ;;  %2013 = vmatprep.subr.bf16.mxu0 %v3325_v52  ;;  %v3405_v49 = vld [vmem:[%s4273_s12 + $0x294] ss:$8 sps:$4 sm:$0xff]   ;;  %v3406_v52 = vld [vmem:[%s4273_s12 + $0x390] ss:$8 sps:$4 sm:$0xff]  }
 0x117   : > { %2054 = vmatprep.subr.bf16.mxu1 %v3327_v54  ;;  %v3414_v54 = vld [vmem:[%s4273_s12 + $0x3a4] ss:$8 sps:$4 sm:$0xff]  }
 0x119   : > { %2014 = vmatpush1.bf16.msra.mxu0 %v3329_v55  ;;  %v3409_v55 = vld [vmem:[%s4273_s12 + $0x2a0] ss:$8 sps:$4 sm:$0xff]  }
 0x11a   : > { %2055 = vmatpush1.bf16.msra.mxu1 %v3330_v56  ;;  %2015 = vmatprep.subr.bf16.mxu0 %v3331_v57  ;;  %v3412_v56 = vld [vmem:[%s4273_s12 + $0x3a0] ss:$8 sps:$4 sm:$0xff]   ;;  %v3417_v57 = vld [vmem:[%s4273_s12 + $0x2b4] ss:$8 sps:$4 sm:$0xff]  }
 0x11b   : > { %2056 = vmatprep.subr.bf16.mxu1 %v3333_v58  ;;  %v3420_v58 = vld [vmem:[%s4273_s12 + $0x3b4] ss:$8 sps:$4 sm:$0xff]  }
 0x11d   : > { %2016 = vmatpush1.bf16.msra.mxu0 %v3335_v59  ;;  %v3415_v59 = vld [vmem:[%s4273_s12 + $0x2b0] ss:$8 sps:$4 sm:$0xff]  }
 0x11e   : > { %2057 = vmatpush1.bf16.msra.mxu1 %v3336_v60  ;;  %2017 = vmatprep.subr.bf16.mxu0 %v3337_v61  ;;  %v3418_v60 = vld [vmem:[%s4273_s12 + $0x3b0] ss:$8 sps:$4 sm:$0xff]   ;;  %v3423_v61 = vld [vmem:[%s4273_s12 + $0x2c4] ss:$8 sps:$4 sm:$0xff]  }
 0x11f   : > { %2058 = vmatprep.subr.bf16.mxu1 %v3339_v62  ;;  %v3426_v62 = vld [vmem:[%s4273_s12 + $0x3c4] ss:$8 sps:$4 sm:$0xff]  }
 0x121   : > { %2018 = vmatpush1.bf16.msra.mxu0 %v3341_v63  ;;  %v3421_v63 = vld [vmem:[%s4273_s12 + $0x2c0] ss:$8 sps:$4 sm:$0xff]  }
 0x122   : > { %2059 = vmatpush1.bf16.msra.mxu1 %v3342_v0  ;;  %2019 = vmatprep.subr.bf16.mxu0 %v3343_v1  ;;  %v3424_v0 = vld [vmem:[%s4273_s12 + $0x3c0] ss:$8 sps:$4 sm:$0xff]   ;;  %v3429_v1 = vld [vmem:[%s4273_s12 + $0x2d4] ss:$8 sps:$4 sm:$0xff]  }
 0x123   : > { %2060 = vmatprep.subr.bf16.mxu1 %v3345_v2  ;;  %v3432_v2 = vld [vmem:[%s4273_s12 + $0x3d4] ss:$8 sps:$4 sm:$0xff]  }
 0x125   : > { %2020 = vmatpush1.bf16.msra.mxu0 %v3347_v3  ;;  %v3427_v3 = vld [vmem:[%s4273_s12 + $0x2d0] ss:$8 sps:$4 sm:$0xff]  }
 0x126   : > { %2061 = vmatpush1.bf16.msra.mxu1 %v3348_v4  ;;  %2071 = vmatprep.subr.bf16.mxu0 %v3351_v7  ;;  %v3430_v4 = vld [vmem:[%s4273_s12 + $0x3d0] ss:$8 sps:$4 sm:$0xff]   ;;  %v3433_v7 = vld [vmem:[%s4273_s12 + $0x2e0] ss:$8 sps:$4 sm:$0xff]  }
 0x127   : > { %2112 = vmatprep.subr.bf16.mxu1 %v3354_v8  ;;  %v3436_v8 = vld [vmem:[%s4273_s12 + $0x3e0] ss:$8 sps:$4 sm:$0xff]  }
 0x128   : > { %2022 = vmatmul.mubr.bf16.vlgmr.msra.gmra.mrb[0].mxu0 %v437_v9  ;;  %v3441_v9 = vld [vmem:[%s4273_s12 + $0x2f4] ss:$8 sps:$4 sm:$0xff]  }
 0x129   : > { %2063 = vmatmul.mubr.bf16.vlgmr.msra.gmra.mrb[0].mxu1 %v439_v10  ;;  %2072 = vmatpush1.bf16.msra.mxu0 %v3349_v11  ;;  %v3444_v10 = vld [vmem:[%s4273_s12 + $0x3f4] ss:$8 sps:$4 sm:$0xff]   ;;  %v3439_v11 = vld [vmem:[%s4273_s12 + $0x2f0] ss:$8 sps:$4 sm:$0xff]  }
 0x12a   : > { %2113 = vmatpush1.bf16.msra.mxu1 %v3352_v12  ;;  %2073 = vmatprep.subr.bf16.mxu0 %v3357_v13  ;;  %v3442_v12 = vld [vmem:[%s4273_s12 + $0x3f0] ss:$8 sps:$4 sm:$0xff]   ;;  %v425_v13 = vld [vmem:[%s4266_s2 + $0x20] sm:$0xff] }
 0x12b   : > { %2114 = vmatprep.subr.bf16.mxu1 %v3360_v14  ;;  %2103 = vmatprep.mubr.bf16.mxu0 %v442_v38  ;;  %v427_v14 = vld [vmem:[%s4266_s2 + $0x30] sm:$0xff]  ;;  %v3474_v38 = vld [vmem:[%s4273_s12 + $0x544] ss:$8 sps:$4 sm:$0xff]  }
 0x12c   : > { %2144 = vmatprep.mubr.bf16.mxu1 %v444_v41  ;;  %v3477_v41 = vld [vmem:[%s4273_s12 + $0x454] ss:$8 sps:$4 sm:$0xff]  }
 0x12d   : > { %2074 = vmatpush1.bf16.msra.mxu0 %v3355_v15  ;;  %v3447_v15 = vld [vmem:[%s4273_s12 + $0x404] ss:$8 sps:$4 sm:$0xff]  }
 0x12e   : > { %2115 = vmatpush1.bf16.msra.mxu1 %v3358_v16  ;;  %2075 = vmatprep.subr.bf16.mxu0 %v3363_v17  ;;  %v3450_v16 = vld [vmem:[%s4273_s12 + $0x504] ss:$8 sps:$4 sm:$0xff]   ;;  %v441_v17 = vpack.c.bf16 %v425_v13, %v425_v13 }
 0x12f   : > { %2116 = vmatprep.subr.bf16.mxu1 %v3366_v18  ;;  %v443_v18 = vpack.c.bf16 %v427_v14, %v427_v14  ;;  %v3531_v13 = vld [vmem:[%s4273_s12 + $0x4e4] ss:$8 sps:$4 sm:$0xff]  }
 0x130   : > { %v3534_v14 = vld [vmem:[%s4273_s12 + $0x5e4] ss:$8 sps:$4 sm:$0xff]  }
 0x131   : > { %2076 = vmatpush1.bf16.msra.mxu0 %v3361_v19  ;;  %v3445_v19 = vld [vmem:[%s4273_s12 + $0x400] ss:$8 sps:$4 sm:$0xff]  }
 0x132   : > { %2117 = vmatpush1.bf16.msra.mxu1 %v3364_v20  ;;  %2077 = vmatprep.subr.bf16.mxu0 %v3369_v21  ;;  %v3448_v20 = vld [vmem:[%s4273_s12 + $0x500] ss:$8 sps:$4 sm:$0xff]   ;;  %v3453_v21 = vld [vmem:[%s4273_s12 + $0x414] ss:$8 sps:$4 sm:$0xff]  }
 0x133   : > { %2118 = vmatprep.subr.bf16.mxu1 %v3372_v22  ;;  %v3456_v22 = vld [vmem:[%s4273_s12 + $0x514] ss:$8 sps:$4 sm:$0xff]  }
 0x135   : > { %2078 = vmatpush1.bf16.msra.mxu0 %v3367_v23  ;;  %v430_v23 = vld [vmem:[%s4266_s2 + $0x48] sm:$0xff] }
 0x136   : > { %2119 = vmatpush1.bf16.msra.mxu1 %v3370_v24  ;;  %2079 = vmatprep.subr.bf16.mxu0 %v3375_v25  ;;  %v3451_v24 = vld [vmem:[%s4273_s12 + $0x410] ss:$8 sps:$4 sm:$0xff]  }
 0x137   : > { %2120 = vmatprep.subr.bf16.mxu1 %v3378_v26  ;;  %v3454_v25 = vld [vmem:[%s4273_s12 + $0x510] ss:$8 sps:$4 sm:$0xff]   ;;  %v446_v26 = vpack.c.bf16 %v430_v23, %v430_v23  ;;  %v3543_v23 = vld [vmem:[%s4273_s12 + $0x604] ss:$8 sps:$4 sm:$0xff]  }
 0x139   : > { %2080 = vmatpush1.bf16.msra.mxu0 %v3373_v27  ;;  %v432_v27 = vld [vmem:[%s4266_s2 + $0x58] sm:$0xff] }
 0x13a   : > { %2121 = vmatpush1.bf16.msra.mxu1 %v3376_v28  ;;  %2081 = vmatprep.subr.bf16.mxu0 %v3381_v29  ;;  %v3459_v28 = vld [vmem:[%s4273_s12 + $0x424] ss:$8 sps:$4 sm:$0xff]   ;;  %v448_v29 = vpack.c.bf16 %v432_v27, %v432_v27 }
 0x13b   : > { %2122 = vmatprep.subr.bf16.mxu1 %v3384_v30  ;;  %v3462_v30 = vld [vmem:[%s4273_s12 + $0x524] ss:$8 sps:$4 sm:$0xff]  }
 0x13c   : > { %v434_v27 = vld [vmem:[%s4266_s2 + $0x68] sm:$0xff] }
 0x13d   : > { %2082 = vmatpush1.bf16.msra.mxu0 %v3379_v31  ;;  %v3457_v31 = vld [vmem:[%s4273_s12 + $0x420] ss:$8 sps:$4 sm:$0xff]  }
 0x13e   : > { %2123 = vmatpush1.bf16.msra.mxu1 %v3382_v32  ;;  %2083 = vmatprep.subr.bf16.mxu0 %v3387_v33  ;;  %v3460_v32 = vld [vmem:[%s4273_s12 + $0x520] ss:$8 sps:$4 sm:$0xff]   ;;  %v3465_v33 = vld [vmem:[%s4273_s12 + $0x434] ss:$8 sps:$4 sm:$0xff]  }
 0x13f   : > { %2124 = vmatprep.subr.bf16.mxu1 %v3390_v34  ;;  %v3468_v34 = vld [vmem:[%s4273_s12 + $0x534] ss:$8 sps:$4 sm:$0xff]  }
 0x141   : > { %2084 = vmatpush1.bf16.msra.mxu0 %v3385_v36  ;;  %v3466_v36 = vld [vmem:[%s4273_s12 + $0x530] ss:$8 sps:$4 sm:$0xff]  }
 0x142   : > { %2125 = vmatpush1.bf16.msra.mxu1 %v3388_v37  ;;  %2085 = vmatprep.subr.bf16.mxu0 %v3393_v40  ;;  %v3471_v37 = vld [vmem:[%s4273_s12 + $0x444] ss:$8 sps:$4 sm:$0xff]   ;;  %v3472_v40 = vld [vmem:[%s4273_s12 + $0x540] ss:$8 sps:$4 sm:$0xff]  }
 0x143   : > { %2126 = vmatprep.subr.bf16.mxu1 %v3396_v42  ;;  %v3480_v42 = vld [vmem:[%s4273_s12 + $0x554] ss:$8 sps:$4 sm:$0xff]  }
 0x145   : > { %2086 = vmatpush1.bf16.msra.mxu0 %v3391_v43  ;;  %v3475_v43 = vld [vmem:[%s4273_s12 + $0x450] ss:$8 sps:$4 sm:$0xff]  }
 0x146   : > { %2127 = vmatpush1.bf16.msra.mxu1 %v3394_v44  ;;  %2087 = vmatprep.subr.bf16.mxu0 %v3399_v45  ;;  %v3478_v44 = vld [vmem:[%s4273_s12 + $0x550] ss:$8 sps:$4 sm:$0xff]   ;;  %v3483_v45 = vld [vmem:[%s4273_s12 + $0x464] ss:$8 sps:$4 sm:$0xff]  }
 0x147   : > { %2128 = vmatprep.subr.bf16.mxu1 %v3402_v46  ;;  %v3486_v46 = vld [vmem:[%s4273_s12 + $0x564] ss:$8 sps:$4 sm:$0xff]  }
 0x149   : > { %2088 = vmatpush1.bf16.msra.mxu0 %v3397_v47  ;;  %v3481_v47 = vld [vmem:[%s4273_s12 + $0x460] ss:$8 sps:$4 sm:$0xff]  }
 0x14a   : > { %2129 = vmatpush1.bf16.msra.mxu1 %v3400_v48  ;;  %2089 = vmatprep.subr.bf16.mxu0 %v3405_v49  ;;  %v3484_v48 = vld [vmem:[%s4273_s12 + $0x560] ss:$8 sps:$4 sm:$0xff]   ;;  %v3489_v49 = vld [vmem:[%s4273_s12 + $0x474] ss:$8 sps:$4 sm:$0xff]  }
 0x14b   : > { %2130 = vmatprep.subr.bf16.mxu1 %v3408_v50  ;;  %v3492_v50 = vld [vmem:[%s4273_s12 + $0x574] ss:$8 sps:$4 sm:$0xff]  }
 0x14d   : > { %2090 = vmatpush1.bf16.msra.mxu0 %v3403_v51  ;;  %v3487_v51 = vld [vmem:[%s4273_s12 + $0x470] ss:$8 sps:$4 sm:$0xff]  }
 0x14e   : > { %2131 = vmatpush1.bf16.msra.mxu1 %v3406_v52  ;;  %2091 = vmatprep.subr.bf16.mxu0 %v3411_v53  ;;  %v3490_v52 = vld [vmem:[%s4273_s12 + $0x570] ss:$8 sps:$4 sm:$0xff]   ;;  %v3495_v53 = vld [vmem:[%s4273_s12 + $0x484] ss:$8 sps:$4 sm:$0xff]  }
 0x14f   : > { %2132 = vmatprep.subr.bf16.mxu1 %v3414_v54  ;;  %v3498_v54 = vld [vmem:[%s4273_s12 + $0x584] ss:$8 sps:$4 sm:$0xff]  }
 0x151   : > { %2092 = vmatpush1.bf16.msra.mxu0 %v3409_v55  ;;  %v3493_v55 = vld [vmem:[%s4273_s12 + $0x480] ss:$8 sps:$4 sm:$0xff]  }
 0x152   : > { %2133 = vmatpush1.bf16.msra.mxu1 %v3412_v56  ;;  %2093 = vmatprep.subr.bf16.mxu0 %v3417_v57  ;;  %v3496_v56 = vld [vmem:[%s4273_s12 + $0x580] ss:$8 sps:$4 sm:$0xff]   ;;  %v3501_v57 = vld [vmem:[%s4273_s12 + $0x494] ss:$8 sps:$4 sm:$0xff]  }
 0x153   : > { %2134 = vmatprep.subr.bf16.mxu1 %v3420_v58  ;;  %v3504_v58 = vld [vmem:[%s4273_s12 + $0x594] ss:$8 sps:$4 sm:$0xff]  }
 0x155   : > { %2094 = vmatpush1.bf16.msra.mxu0 %v3415_v59  ;;  %v3499_v59 = vld [vmem:[%s4273_s12 + $0x490] ss:$8 sps:$4 sm:$0xff]  }
 0x156   : > { %2135 = vmatpush1.bf16.msra.mxu1 %v3418_v60  ;;  %2095 = vmatprep.subr.bf16.mxu0 %v3423_v61  ;;  %v3502_v60 = vld [vmem:[%s4273_s12 + $0x590] ss:$8 sps:$4 sm:$0xff]   ;;  %v3507_v61 = vld [vmem:[%s4273_s12 + $0x4a4] ss:$8 sps:$4 sm:$0xff]  }
 0x157   : > { %2136 = vmatprep.subr.bf16.mxu1 %v3426_v62  ;;  %v3510_v62 = vld [vmem:[%s4273_s12 + $0x5a4] ss:$8 sps:$4 sm:$0xff]  }
 0x159   : > { %2096 = vmatpush1.bf16.msra.mxu0 %v3421_v63  ;;  %v3505_v63 = vld [vmem:[%s4273_s12 + $0x4a0] ss:$8 sps:$4 sm:$0xff]  }
 0x15a   : > { %2137 = vmatpush1.bf16.msra.mxu1 %v3424_v0  ;;  %2097 = vmatprep.subr.bf16.mxu0 %v3429_v1  ;;  %v3508_v0 = vld [vmem:[%s4273_s12 + $0x5a0] ss:$8 sps:$4 sm:$0xff]   ;;  %v3513_v1 = vld [vmem:[%s4273_s12 + $0x4b4] ss:$8 sps:$4 sm:$0xff]  }
 0x15b   : > { %2138 = vmatprep.subr.bf16.mxu1 %v3432_v2  ;;  %v3516_v2 = vld [vmem:[%s4273_s12 + $0x5b4] ss:$8 sps:$4 sm:$0xff]  }
 0x15d   : > { %2098 = vmatpush1.bf16.msra.mxu0 %v3427_v3  ;;  %v3511_v3 = vld [vmem:[%s4273_s12 + $0x4b0] ss:$8 sps:$4 sm:$0xff]  }
 0x15e   : > { %2139 = vmatpush1.bf16.msra.mxu1 %v3430_v4  ;;  %2099 = vmatprep.subr.bf16.mxu0 %v3435_v5  ;;  %v3514_v4 = vld [vmem:[%s4273_s12 + $0x5b0] ss:$8 sps:$4 sm:$0xff]   ;;  %v3519_v5 = vld [vmem:[%s4273_s12 + $0x4c4] ss:$8 sps:$4 sm:$0xff]  }
 0x15f   : > { %2140 = vmatprep.subr.bf16.mxu1 %v3438_v6  ;;  %v3522_v6 = vld [vmem:[%s4273_s12 + $0x5c4] ss:$8 sps:$4 sm:$0xff]  }
 0x161   : > { %2100 = vmatpush1.bf16.msra.mxu0 %v3433_v7  ;;  %v3517_v7 = vld [vmem:[%s4273_s12 + $0x4c0] ss:$8 sps:$4 sm:$0xff]  }
 0x162   : > { %2141 = vmatpush1.bf16.msra.mxu1 %v3436_v8  ;;  %2101 = vmatprep.subr.bf16.mxu0 %v3441_v9  ;;  %v3520_v8 = vld [vmem:[%s4273_s12 + $0x5c0] ss:$8 sps:$4 sm:$0xff]   ;;  %v3525_v9 = vld [vmem:[%s4273_s12 + $0x4d4] ss:$8 sps:$4 sm:$0xff]  }
 0x163   : > { %2142 = vmatprep.subr.bf16.mxu1 %v3444_v10  ;;  %v3528_v10 = vld [vmem:[%s4273_s12 + $0x5d4] ss:$8 sps:$4 sm:$0xff]  }
 0x165   : > { %2102 = vmatpush1.bf16.msra.mxu0 %v3439_v11  ;;  %v3523_v11 = vld [vmem:[%s4273_s12 + $0x4d0] ss:$8 sps:$4 sm:$0xff]  }
 0x166   : > { %2143 = vmatpush1.bf16.msra.mxu1 %v3442_v12  ;;  %2153 = vmatprep.subr.bf16.mxu0 %v3447_v15  ;;  %v3526_v12 = vld [vmem:[%s4273_s12 + $0x5d0] ss:$8 sps:$4 sm:$0xff]   ;;  %v3529_v15 = vld [vmem:[%s4273_s12 + $0x4e0] ss:$8 sps:$4 sm:$0xff]  }
 0x167   : > { %2194 = vmatprep.subr.bf16.mxu1 %v3450_v16  ;;  %v3532_v16 = vld [vmem:[%s4273_s12 + $0x5e0] ss:$8 sps:$4 sm:$0xff]  }
 0x168   : > { %2104 = vmatmul.mubr.bf16.vlgmr.msra.gmra.mrb[4].mxu0 %v441_v17  ;;  %v3537_v17 = vld [vmem:[%s4273_s12 + $0x4f4] ss:$8 sps:$4 sm:$0xff]  }
 0x169   : > { %2145 = vmatmul.mubr.bf16.vlgmr.msra.gmra.mrb[4].mxu1 %v443_v18  ;;  %2154 = vmatpush1.bf16.msra.mxu0 %v3445_v19  ;;  %v3540_v18 = vld [vmem:[%s4273_s12 + $0x5f4] ss:$8 sps:$4 sm:$0xff]   ;;  %v3535_v19 = vld [vmem:[%s4273_s12 + $0x4f0] ss:$8 sps:$4 sm:$0xff]  }
 0x16a   : > { %2195 = vmatpush1.bf16.msra.mxu1 %v3448_v20  ;;  %2155 = vmatprep.subr.bf16.mxu0 %v3453_v21  ;;  %v3538_v20 = vld [vmem:[%s4273_s12 + $0x5f0] ss:$8 sps:$4 sm:$0xff]   ;;  %v429_v21 = vld [vmem:[%s4266_s2 + $0x40] sm:$0xff] }
 0x16b   : > { %2196 = vmatprep.subr.bf16.mxu1 %v3456_v22  ;;  %2185 = vmatprep.mubr.bf16.mxu0 %v446_v26  ;;  %v431_v22 = vld [vmem:[%s4266_s2 + $0x50] sm:$0xff] }
 0x16c   : > { %2226 = vmatprep.mubr.bf16.mxu1 %v448_v29  ;;  %v447_v26 = vpack.c.bf16 %v431_v22, %v431_v22  ;;  %v3541_v29 = vld [vmem:[%s4273_s12 + $0x600] ss:$8 sps:$4 sm:$0xff]   ;;  %v3630_v22 = vld [vmem:[%s4273_s12 + $0x7e4] ss:$8 sps:$4 sm:$0xff]  }
 0x16d   : > { %2156 = vmatpush1.bf16.msra.mxu0 %v3451_v24  ;;  %v3546_v24 = vld [vmem:[%s4273_s12 + $0x704] ss:$8 sps:$4 sm:$0xff]  }
 0x16e   : > { %2197 = vmatpush1.bf16.msra.mxu1 %v3454_v25  ;;  %2157 = vmatprep.subr.bf16.mxu0 %v3459_v28  ;;  %v445_v25 = vpack.c.bf16 %v429_v21, %v429_v21  ;;  %v436_v28 = vld [vmem:[%s4266_s2 + $0x78] sm:$0xff]  ;;  %v3627_v21 = vld [vmem:[%s4273_s12 + $0x6e4] ss:$8 sps:$4 sm:$0xff]  }
 0x16f   : > { %2198 = vmatprep.subr.bf16.mxu1 %v3462_v30  ;;  %v3544_v30 = vld [vmem:[%s4273_s12 + $0x700] ss:$8 sps:$4 sm:$0xff]  }
 0x171   : > { %2158 = vmatpush1.bf16.msra.mxu0 %v3457_v31  ;;  %v3549_v31 = vld [vmem:[%s4273_s12 + $0x614] ss:$8 sps:$4 sm:$0xff]  }
 0x172   : > { %2199 = vmatpush1.bf16.msra.mxu1 %v3460_v32  ;;  %2159 = vmatprep.subr.bf16.mxu0 %v3465_v33  ;;  %v3552_v32 = vld [vmem:[%s4273_s12 + $0x714] ss:$8 sps:$4 sm:$0xff]   ;;  %v450_v33 = vpack.c.bf16 %v434_v27, %v434_v27  ;;  %v3631_v27 = vld [vmem:[%s4273_s12 + $0x6f0] ss:$8 sps:$4 sm:$0xff]  }
 0x173   : > { %2200 = vmatprep.subr.bf16.mxu1 %v3468_v34  ;;  %v452_v34 = vpack.c.bf16 %v436_v28, %v436_v28  ;;  %v3634_v28 = vld [vmem:[%s4273_s12 + $0x7f0] ss:$8 sps:$4 sm:$0xff]  }
 0x175   : > { %2160 = vmatpush1.bf16.msra.mxu0 %v3463_v35  ;;  %v3547_v35 = vld [vmem:[%s4273_s12 + $0x610] ss:$8 sps:$4 sm:$0xff]  }
 0x176   : > { %2201 = vmatpush1.bf16.msra.mxu1 %v3466_v36  ;;  %2161 = vmatprep.subr.bf16.mxu0 %v3471_v37  ;;  %v3550_v36 = vld [vmem:[%s4273_s12 + $0x710] ss:$8 sps:$4 sm:$0xff]   ;;  %v3555_v37 = vld [vmem:[%s4273_s12 + $0x624] ss:$8 sps:$4 sm:$0xff]  }
 0x177   : > { %2202 = vmatprep.subr.bf16.mxu1 %v3474_v38  ;;  %v3558_v38 = vld [vmem:[%s4273_s12 + $0x724] ss:$8 sps:$4 sm:$0xff]  }
 0x179   : > { %2162 = vmatpush1.bf16.msra.mxu0 %v3469_v39  ;;  %v3553_v39 = vld [vmem:[%s4273_s12 + $0x620] ss:$8 sps:$4 sm:$0xff]  }
 0x17a   : > { %2203 = vmatpush1.bf16.msra.mxu1 %v3472_v40  ;;  %2163 = vmatprep.subr.bf16.mxu0 %v3477_v41  ;;  %v3556_v40 = vld [vmem:[%s4273_s12 + $0x720] ss:$8 sps:$4 sm:$0xff]   ;;  %v3561_v41 = vld [vmem:[%s4273_s12 + $0x634] ss:$8 sps:$4 sm:$0xff]  }
 0x17b   : > { %2204 = vmatprep.subr.bf16.mxu1 %v3480_v42  ;;  %v3564_v42 = vld [vmem:[%s4273_s12 + $0x734] ss:$8 sps:$4 sm:$0xff]  }
 0x17d   : > { %2164 = vmatpush1.bf16.msra.mxu0 %v3475_v43  ;;  %v3559_v43 = vld [vmem:[%s4273_s12 + $0x630] ss:$8 sps:$4 sm:$0xff]  }
 0x17e   : > { %2205 = vmatpush1.bf16.msra.mxu1 %v3478_v44  ;;  %2165 = vmatprep.subr.bf16.mxu0 %v3483_v45  ;;  %v3562_v44 = vld [vmem:[%s4273_s12 + $0x730] ss:$8 sps:$4 sm:$0xff]   ;;  %v3567_v45 = vld [vmem:[%s4273_s12 + $0x644] ss:$8 sps:$4 sm:$0xff]  }
 0x17f   : > { %2206 = vmatprep.subr.bf16.mxu1 %v3486_v46  ;;  %v3570_v46 = vld [vmem:[%s4273_s12 + $0x744] ss:$8 sps:$4 sm:$0xff]  }
 0x181   : > { %2166 = vmatpush1.bf16.msra.mxu0 %v3481_v47  ;;  %v3565_v47 = vld [vmem:[%s4273_s12 + $0x640] ss:$8 sps:$4 sm:$0xff]  }
 0x182   : > { %2207 = vmatpush1.bf16.msra.mxu1 %v3484_v48  ;;  %2167 = vmatprep.subr.bf16.mxu0 %v3489_v49  ;;  %v3568_v48 = vld [vmem:[%s4273_s12 + $0x740] ss:$8 sps:$4 sm:$0xff]   ;;  %v3573_v49 = vld [vmem:[%s4273_s12 + $0x654] ss:$8 sps:$4 sm:$0xff]  }
 0x183   : > { %2208 = vmatprep.subr.bf16.mxu1 %v3492_v50  ;;  %v3576_v50 = vld [vmem:[%s4273_s12 + $0x754] ss:$8 sps:$4 sm:$0xff]  }
 0x185   : > { %2168 = vmatpush1.bf16.msra.mxu0 %v3487_v51  ;;  %v3571_v51 = vld [vmem:[%s4273_s12 + $0x650] ss:$8 sps:$4 sm:$0xff]  }
 0x186   : > { %2209 = vmatpush1.bf16.msra.mxu1 %v3490_v52  ;;  %2169 = vmatprep.subr.bf16.mxu0 %v3495_v53  ;;  %v3574_v52 = vld [vmem:[%s4273_s12 + $0x750] ss:$8 sps:$4 sm:$0xff]   ;;  %v3579_v53 = vld [vmem:[%s4273_s12 + $0x664] ss:$8 sps:$4 sm:$0xff]  }
 0x187   : > { %2210 = vmatprep.subr.bf16.mxu1 %v3498_v54  ;;  %v3582_v54 = vld [vmem:[%s4273_s12 + $0x764] ss:$8 sps:$4 sm:$0xff]  }
 0x189   : > { %2170 = vmatpush1.bf16.msra.mxu0 %v3493_v55  ;;  %v3577_v55 = vld [vmem:[%s4273_s12 + $0x660] ss:$8 sps:$4 sm:$0xff]  }
 0x18a   : > { %2211 = vmatpush1.bf16.msra.mxu1 %v3496_v56  ;;  %2171 = vmatprep.subr.bf16.mxu0 %v3501_v57  ;;  %v3580_v56 = vld [vmem:[%s4273_s12 + $0x760] ss:$8 sps:$4 sm:$0xff]   ;;  %v3585_v57 = vld [vmem:[%s4273_s12 + $0x674] ss:$8 sps:$4 sm:$0xff]  }
 0x18b   : > { %2212 = vmatprep.subr.bf16.mxu1 %v3504_v58  ;;  %v3588_v58 = vld [vmem:[%s4273_s12 + $0x774] ss:$8 sps:$4 sm:$0xff]  }
 0x18d   : > { %2172 = vmatpush1.bf16.msra.mxu0 %v3499_v59  ;;  %v3583_v59 = vld [vmem:[%s4273_s12 + $0x670] ss:$8 sps:$4 sm:$0xff]  }
 0x18e   : > { %2213 = vmatpush1.bf16.msra.mxu1 %v3502_v60  ;;  %2173 = vmatprep.subr.bf16.mxu0 %v3507_v61  ;;  %v3586_v60 = vld [vmem:[%s4273_s12 + $0x770] ss:$8 sps:$4 sm:$0xff]   ;;  %v3591_v61 = vld [vmem:[%s4273_s12 + $0x684] ss:$8 sps:$4 sm:$0xff]  }
 0x18f   : > { %2214 = vmatprep.subr.bf16.mxu1 %v3510_v62  ;;  %v3594_v62 = vld [vmem:[%s4273_s12 + $0x784] ss:$8 sps:$4 sm:$0xff]  }
 0x191   : > { %2174 = vmatpush1.bf16.msra.mxu0 %v3505_v63  ;;  %v3589_v63 = vld [vmem:[%s4273_s12 + $0x680] ss:$8 sps:$4 sm:$0xff]  }
 0x192   : > { %2215 = vmatpush1.bf16.msra.mxu1 %v3508_v0  ;;  %2175 = vmatprep.subr.bf16.mxu0 %v3513_v1  ;;  %v3592_v0 = vld [vmem:[%s4273_s12 + $0x780] ss:$8 sps:$4 sm:$0xff]   ;;  %v3597_v1 = vld [vmem:[%s4273_s12 + $0x694] ss:$8 sps:$4 sm:$0xff]  }
 0x193   : > { %2216 = vmatprep.subr.bf16.mxu1 %v3516_v2  ;;  %v3600_v2 = vld [vmem:[%s4273_s12 + $0x794] ss:$8 sps:$4 sm:$0xff]  }
 0x195   : > { %2176 = vmatpush1.bf16.msra.mxu0 %v3511_v3  ;;  %v3595_v3 = vld [vmem:[%s4273_s12 + $0x690] ss:$8 sps:$4 sm:$0xff]  }
 0x196   : > { %2217 = vmatpush1.bf16.msra.mxu1 %v3514_v4  ;;  %2177 = vmatprep.subr.bf16.mxu0 %v3519_v5  ;;  %v3598_v4 = vld [vmem:[%s4273_s12 + $0x790] ss:$8 sps:$4 sm:$0xff]   ;;  %v3603_v5 = vld [vmem:[%s4273_s12 + $0x6a4] ss:$8 sps:$4 sm:$0xff]  }
 0x197   : > { %2218 = vmatprep.subr.bf16.mxu1 %v3522_v6  ;;  %v3606_v6 = vld [vmem:[%s4273_s12 + $0x7a4] ss:$8 sps:$4 sm:$0xff]  }
 0x199   : > { %2178 = vmatpush1.bf16.msra.mxu0 %v3517_v7  ;;  %v3601_v7 = vld [vmem:[%s4273_s12 + $0x6a0] ss:$8 sps:$4 sm:$0xff]  }
 0x19a   : > { %2219 = vmatpush1.bf16.msra.mxu1 %v3520_v8  ;;  %2179 = vmatprep.subr.bf16.mxu0 %v3525_v9  ;;  %v3604_v8 = vld [vmem:[%s4273_s12 + $0x7a0] ss:$8 sps:$4 sm:$0xff]   ;;  %v3609_v9 = vld [vmem:[%s4273_s12 + $0x6b4] ss:$8 sps:$4 sm:$0xff]  }
 0x19b   : > { %2220 = vmatprep.subr.bf16.mxu1 %v3528_v10  ;;  %v3612_v10 = vld [vmem:[%s4273_s12 + $0x7b4] ss:$8 sps:$4 sm:$0xff]  }
 0x19d   : > { %2180 = vmatpush1.bf16.msra.mxu0 %v3523_v11  ;;  %v3607_v11 = vld [vmem:[%s4273_s12 + $0x6b0] ss:$8 sps:$4 sm:$0xff]  }
 0x19e   : > { %2221 = vmatpush1.bf16.msra.mxu1 %v3526_v12  ;;  %2181 = vmatprep.subr.bf16.mxu0 %v3531_v13  ;;  %v3610_v12 = vld [vmem:[%s4273_s12 + $0x7b0] ss:$8 sps:$4 sm:$0xff]   ;;  %v3615_v13 = vld [vmem:[%s4273_s12 + $0x6c4] ss:$8 sps:$4 sm:$0xff]  }
 0x19f   : > { %2222 = vmatprep.subr.bf16.mxu1 %v3534_v14  ;;  %v3618_v14 = vld [vmem:[%s4273_s12 + $0x7c4] ss:$8 sps:$4 sm:$0xff]  }
 0x1a1   : > { %2182 = vmatpush1.bf16.msra.mxu0 %v3529_v15  ;;  %v3613_v15 = vld [vmem:[%s4273_s12 + $0x6c0] ss:$8 sps:$4 sm:$0xff]  }
 0x1a2   : > { %2223 = vmatpush1.bf16.msra.mxu1 %v3532_v16  ;;  %2183 = vmatprep.subr.bf16.mxu0 %v3537_v17  ;;  %v3616_v16 = vld [vmem:[%s4273_s12 + $0x7c0] ss:$8 sps:$4 sm:$0xff]   ;;  %v3621_v17 = vld [vmem:[%s4273_s12 + $0x6d4] ss:$8 sps:$4 sm:$0xff]  }
 0x1a3   : > { %2224 = vmatprep.subr.bf16.mxu1 %v3540_v18  ;;  %v3624_v18 = vld [vmem:[%s4273_s12 + $0x7d4] ss:$8 sps:$4 sm:$0xff]  }
 0x1a5   : > { %2184 = vmatpush1.bf16.msra.mxu0 %v3535_v19  ;;  %v3619_v19 = vld [vmem:[%s4273_s12 + $0x6d0] ss:$8 sps:$4 sm:$0xff]  }
 0x1a6   : > { %2225 = vmatpush1.bf16.msra.mxu1 %v3538_v20  ;;  %2235 = vmatprep.subr.bf16.mxu0 %v3543_v23  ;;  %v3622_v20 = vld [vmem:[%s4273_s12 + $0x7d0] ss:$8 sps:$4 sm:$0xff]   ;;  %v3625_v23 = vld [vmem:[%s4273_s12 + $0x6e0] ss:$8 sps:$4 sm:$0xff]  }
 0x1a7   : > { %2276 = vmatprep.subr.bf16.mxu1 %v3546_v24  ;;  %v3628_v24 = vld [vmem:[%s4273_s12 + $0x7e0] ss:$8 sps:$4 sm:$0xff]  }
 0x1a8   : > { %2186 = vmatmul.mubr.bf16.vlgmr.msra.gmra.mrb[8].mxu0 %v445_v25  ;;  %v3633_v25 = vld [vmem:[%s4273_s12 + $0x6f4] ss:$8 sps:$4 sm:$0xff]  }
 0x1a9   : > { %2227 = vmatmul.mubr.bf16.vlgmr.msra.gmra.mrb[8].mxu1 %v447_v26  ;;  %2236 = vmatpush1.bf16.msra.mxu0 %v3541_v29  ;;  %v3636_v26 = vld [vmem:[%s4273_s12 + $0x7f4] ss:$8 sps:$4 sm:$0xff]   ;;  %v433_v29 = vld [vmem:[%s4266_s2 + $0x60] sm:$0xff] }
 0x1aa   : > { %2277 = vmatpush1.bf16.msra.mxu1 %v3544_v30  ;;  %2237 = vmatprep.subr.bf16.mxu0 %v3549_v31  ;;  %v435_v30 = vld [vmem:[%s4266_s2 + $0x70] sm:$0xff]  ;;  %v449_v31 = vpack.c.bf16 %v433_v29, %v433_v29 }
 0x1ab   : > { %2278 = vmatprep.subr.bf16.mxu1 %v3552_v32  ;;  %2267 = vmatprep.mubr.bf16.mxu0 %v450_v33  ;;  %v451_v32 = vpack.c.bf16 %v435_v30, %v435_v30  ;;  %v2345_v29 = vld [vmem:[#allocation9 + $0x10] sm:$0xff] (!%p2975_p8)  ;;  %v2346_v30 = vld [vmem:[#allocation9 + $0x18] sm:$0xff] (!%p2975_p8) }
 0x1ac   : > { %2308 = vmatprep.mubr.bf16.mxu1 %v452_v34 }
 0x1ad   : > { %2238 = vmatpush1.bf16.msra.mxu0 %v3547_v35 }
 0x1ae   : > { %2279 = vmatpush1.bf16.msra.mxu1 %v3550_v36  ;;  %2239 = vmatprep.subr.bf16.mxu0 %v3555_v37 }
 0x1af   : > { %2280 = vmatprep.subr.bf16.mxu1 %v3558_v38 }
 0x1b1   : > { %2240 = vmatpush1.bf16.msra.mxu0 %v3553_v39 }
 0x1b2   : > { %2281 = vmatpush1.bf16.msra.mxu1 %v3556_v40  ;;  %2241 = vmatprep.subr.bf16.mxu0 %v3561_v41 }
 0x1b3   : > { %2282 = vmatprep.subr.bf16.mxu1 %v3564_v42 }
 0x1b5   : > { %2242 = vmatpush1.bf16.msra.mxu0 %v3559_v43 }
 0x1b6   : > { %2283 = vmatpush1.bf16.msra.mxu1 %v3562_v44  ;;  %2243 = vmatprep.subr.bf16.mxu0 %v3567_v45 }
 0x1b7   : > { %2284 = vmatprep.subr.bf16.mxu1 %v3570_v46 }
 0x1b9   : > { %2244 = vmatpush1.bf16.msra.mxu0 %v3565_v47 }
 0x1ba   : > { %2285 = vmatpush1.bf16.msra.mxu1 %v3568_v48  ;;  %2245 = vmatprep.subr.bf16.mxu0 %v3573_v49 }
 0x1bb   : > { %2286 = vmatprep.subr.bf16.mxu1 %v3576_v50 }
 0x1bd   : > { %2246 = vmatpush1.bf16.msra.mxu0 %v3571_v51 }
 0x1be   : > { %2287 = vmatpush1.bf16.msra.mxu1 %v3574_v52  ;;  %2247 = vmatprep.subr.bf16.mxu0 %v3579_v53 }
 0x1bf   : > { %2288 = vmatprep.subr.bf16.mxu1 %v3582_v54 }
 0x1c1   : > { %2248 = vmatpush1.bf16.msra.mxu0 %v3577_v55 }
 0x1c2   : > { %2289 = vmatpush1.bf16.msra.mxu1 %v3580_v56  ;;  %2249 = vmatprep.subr.bf16.mxu0 %v3585_v57 }
 0x1c3   : > { %2290 = vmatprep.subr.bf16.mxu1 %v3588_v58 }
 0x1c5   : > { %2250 = vmatpush1.bf16.msra.mxu0 %v3583_v59 }
 0x1c6   : > { %2291 = vmatpush1.bf16.msra.mxu1 %v3586_v60  ;;  %2251 = vmatprep.subr.bf16.mxu0 %v3591_v61 }
 0x1c7   : > { %2292 = vmatprep.subr.bf16.mxu1 %v3594_v62 }
 0x1c9   : > { %2252 = vmatpush1.bf16.msra.mxu0 %v3589_v63 }
 0x1ca   : > { %2293 = vmatpush1.bf16.msra.mxu1 %v3592_v0  ;;  %2253 = vmatprep.subr.bf16.mxu0 %v3597_v1 }
 0x1cb   : > { %2294 = vmatprep.subr.bf16.mxu1 %v3600_v2 }
 0x1cd   : > { %2254 = vmatpush1.bf16.msra.mxu0 %v3595_v3 }
 0x1ce   : > { %2295 = vmatpush1.bf16.msra.mxu1 %v3598_v4  ;;  %2255 = vmatprep.subr.bf16.mxu0 %v3603_v5 }
 0x1cf   : > { %2296 = vmatprep.subr.bf16.mxu1 %v3606_v6 }
 0x1d1   : > { %2256 = vmatpush1.bf16.msra.mxu0 %v3601_v7 }
 0x1d2   : > { %2297 = vmatpush1.bf16.msra.mxu1 %v3604_v8  ;;  %2257 = vmatprep.subr.bf16.mxu0 %v3609_v9  ;;  %v419_v8 = vld [vmem:[#allocation2] sm:$0xff] }
 0x1d3   : > { %2298 = vmatprep.subr.bf16.mxu1 %v3612_v10 }
 0x1d5   : > { %2258 = vmatpush1.bf16.msra.mxu0 %v3607_v11 }
 0x1d6   : > { %2299 = vmatpush1.bf16.msra.mxu1 %v3610_v12  ;;  %2259 = vmatprep.subr.bf16.mxu0 %v3615_v13  ;;  %v420_v13 = vld [vmem:[#allocation2 + $0x8] sm:$0xff] }
 0x1d7   : > { %2300 = vmatprep.subr.bf16.mxu1 %v3618_v14 }
 0x1d9   : > { %2260 = vmatpush1.bf16.msra.mxu0 %v3613_v15 }
 0x1da   : > { %2301 = vmatpush1.bf16.msra.mxu1 %v3616_v16  ;;  %2261 = vmatprep.subr.bf16.mxu0 %v3621_v17 }
 0x1db   : > { %2302 = vmatprep.subr.bf16.mxu1 %v3624_v18 }
 0x1dd   : > { %2262 = vmatpush1.bf16.msra.mxu0 %v3619_v19  ;;  %v2359_v19 = vld [vmem:[#allocation9 + $0x80] sm:$0xff] (!%p2975_p8) }
 0x1de   : > { %2303 = vmatpush1.bf16.msra.mxu1 %v3622_v20  ;;  %2263 = vmatprep.subr.bf16.mxu0 %v3627_v21  ;;  %v2360_v20 = vld [vmem:[#allocation9 + $0x88] sm:$0xff] (!%p2975_p8)  ;;  %v2343_v21 = vld [vmem:[#allocation9] sm:$0xff] (!%p2975_p8) }
 0x1df   : > { %2304 = vmatprep.subr.bf16.mxu1 %v3630_v22  ;;  %v2329_v22 = vlaneseq (!%p2975_p8) }
 0x1e1   : > { %2264 = vmatpush1.bf16.msra.mxu0 %v3625_v23  ;;  %v3073_v23 = vpack.c.bf16 (!%p2975_p8), %v2360_v20, %v2359_v19  ;;  %v3949_v19 = vmov (!%p2975_p8), 0.0|0.0   ;;  %v2460_v20 = vld [vmem:[#allocation12 + $0x10] sm:$0xff] (!%p2975_p8) }
 0x1e2   : > { %2305 = vmatpush1.bf16.msra.mxu1 %v3628_v24  ;;  %2265 = vmatprep.subr.bf16.mxu0 %v3633_v25  ;;  %v2344_v24 = vld [vmem:[#allocation9 + $0x8] sm:$0xff] (!%p2975_p8)  ;;  %v2361_v25 = vld [vmem:[#allocation9 + $0x90] sm:$0xff] (!%p2975_p8) }
 0x1e3   : > { %2306 = vmatprep.subr.bf16.mxu1 %v3636_v26  ;;  %v2362_v26 = vld [vmem:[#allocation9 + $0x98] sm:$0xff] (!%p2975_p8) }
 0x1e5   : > { %2266 = vmatpush1.bf16.msra.mxu0 %v3631_v27  ;;  %v3075_v27 = vpack.c.bf16 (!%p2975_p8), %v2344_v24, %v2343_v21  ;;  %v2461_v21 = vld [vmem:[#allocation12 + $0x18] sm:$0xff] (!%p2975_p8)  ;;  %v2463_v24 = vld [vmem:[#allocation12 + $0x28] sm:$0xff] (!%p2975_p8) }
 0x1e6   : > { %2307 = vmatpush1.bf16.msra.mxu1 %v3634_v28  ;;  %v3077_v28 = vpack.c.bf16 (!%p2975_p8), %v2362_v26, %v2361_v25  ;;  %3074 = vmatprep.subr.bf16.mxu0 (!%p2975_p8), %v3073_v23  ;;  %v2462_v23 = vld [vmem:[#allocation12 + $0x20] sm:$0xff] (!%p2975_p8)  ;;  %v2464_v26 = vld [vmem:[#allocation12 + $0x30] sm:$0xff] (!%p2975_p8) }
 0x1e7   : > { %3105 = vmatprep.subr.bf16.mxu1 (!%p2975_p8), %v3949_v19  ;;  %v3112_v25 = vpack.c.bf16 (!%p2975_p8), %v2463_v24, %v2462_v23 }
 0x1e8   : > { %2268 = vmatmul.mubr.bf16.vlgmr.msra.gmra.mrb[12].mxu0 %v449_v31  ;;  %v2363_v31 = vld [vmem:[#allocation9 + $0xa0] sm:$0xff] (!%p2975_p8) }
 0x1e9   : > { %2309 = vmatmul.mubr.bf16.vlgmr.msra.gmra.mrb[12].mxu1 %v451_v32  ;;  %v2364_v32 = vld [vmem:[#allocation9 + $0xa8] sm:$0xff] (!%p2975_p8)  ;;  %3076 = vmatpush3.bf16.msra.mxu0 (!%p2975_p8), %v3075_v27  ;;  %v2465_v27 = vld [vmem:[#allocation12 + $0x38] sm:$0xff] (!%p2975_p8) }
 0x1ea   : > { %3078 = vmatprep.subr.bf16.mxu0 (!%p2975_p8), %v3077_v28  ;;  %v3115_v28 = vpack.c.bf16 (!%p2975_p8), %v2465_v27, %v2464_v26 }
 0x1fb   : > { %v2023_v33 = vpop.f32.mrb[0].mxu0 }
 0x1fc   : > { %v2064_v34 = vpop.f32.mrb[0].mxu1  ;;  %v2025_v36 = vpop.f32.mrb[1].mxu0 }
 0x1fd   : > { %v2065_v35 = vadd.f32 %v2064_v34, %v2023_v33  ;;  %v2066_v37 = vpop.f32.mrb[1].mxu1  ;;  %v2027_v39 = vpop.f32.mrb[2].mxu0  ;;  %v3079_v33 = vpack.c.bf16 (!%p2975_p8), %v2346_v30, %v2345_v29  ;;  %v2330_v34 = vshrl.u32 (!%p2975_p8), %v2329_v22, 7  ;;  %v3109_v22 = vpack.c.bf16 (!%p2975_p8), %v2461_v21, %v2460_v20  ;;  %v2466_v29 = vld [vmem:[#allocation12 + $0x40] sm:$0xff] (!%p2975_p8)  ;;  %v2467_v30 = vld [vmem:[#allocation12 + $0x48] sm:$0xff] (!%p2975_p8) }
 0x1fe   : > { %v2067_v38 = vadd.f32 %v2066_v37, %v2025_v36  ;;  %v2068_v40 = vpop.f32.mrb[2].mxu1  ;;  %v2028_v41 = vpop.f32.mrb[3].mxu0  ;;  %v2347_v36 = vld [vmem:[#allocation9 + $0x20] sm:$0xff] (!%p2975_p8)  ;;  %v2348_v37 = vld [vmem:[#allocation9 + $0x28] sm:$0xff] (!%p2975_p8)  ;;  %v2366_v39 = vld [vmem:[#allocation9 + $0xb8] sm:$0xff] (!%p2975_p8) }
 0x1ff   : > { %v2069_v42 = vpop.f32.mrb[3].mxu1  ;;  %3080 = vmatpush3.bf16.msra.mxu0 (!%p2975_p8), %v3079_v33  ;;  %v3083_v40 = vpack.c.bf16 (!%p2975_p8), %v2348_v37, %v2347_v36  ;;  %v2335_v41 = vsub.s32 (!%p2975_p8), 1, %v2330_v34  ;;  %v2469_v33 = vld [vmem:[#allocation12 + $0x58] sm:$0xff] (!%p2975_p8)  ;;  %v2471_v36 = vld [vmem:[#allocation12 + $0x68] sm:$0xff] (!%p2975_p8) }
 0x23b   : > { %v2105_v43 = vpop.f32.mrb[4].mxu0 }
 0x23c   : > { %v2146_v44 = vpop.f32.mrb[4].mxu1  ;;  %v2106_v45 = vadd.f32 %v2105_v43, %v2065_v35  ;;  %v2107_v46 = vpop.f32.mrb[5].mxu0  ;;  %v3081_v35 = vpack.c.bf16 (!%p2975_p8), %v2364_v32, %v2363_v31  ;;  %v2349_v43 = vld [vmem:[#allocation9 + $0x30] sm:$0xff] (!%p2975_p8)  ;;  %v3118_v31 = vpack.c.bf16 (!%p2975_p8), %v2467_v30, %v2466_v29 }
 0x23d   : > { %v2148_v47 = vpop.f32.mrb[5].mxu1  ;;  %v2108_v48 = vadd.f32 %v2107_v46, %v2067_v38  ;;  %v2109_v49 = vpop.f32.mrb[6].mxu0  ;;  %v2365_v38 = vld [vmem:[#allocation9 + $0xb0] sm:$0xff] (!%p2975_p8)  ;;  %v2368_v46 = vld [vmem:[#allocation9 + $0xc8] sm:$0xff] (!%p2975_p8) }
 0x23e   : > { %v2150_v50 = vpop.f32.mrb[6].mxu1  ;;  %v2147_v51 = vadd.f32 %v2146_v44, %v2106_v45  ;;  %v2110_v52 = vpop.f32.mrb[7].mxu0  ;;  %3082 = vmatprep.subr.bf16.mxu0 (!%p2975_p8), %v3081_v35  ;;  %v3085_v42 = vpack.c.bf16 (!%p2975_p8), %v2366_v39, %v2365_v38  ;;  %v2350_v44 = vld [vmem:[#allocation9 + $0x38] sm:$0xff] (!%p2975_p8)  ;;  %v2367_v45 = vld [vmem:[#allocation9 + $0xc0] sm:$0xff] (!%p2975_p8) }
 0x23f   : > { %v2151_v53 = vpop.f32.mrb[7].mxu1  ;;  %v2149_v54 = vadd.f32 %v2148_v47, %v2108_v48  ;;  %v2327_v48 = vld [vmem:[#allocation8] sm:$0x3] (!%p2975_p8)  ;;  %3084 = vmatpush3.bf16.msra.mxu0 (!%p2975_p8), %v3083_v40  ;;  %v3087_v49 = vpack.c.bf16 (!%p2975_p8), %v2350_v44, %v2349_v43  ;;  %v2351_v52 = vld [vmem:[#allocation9 + $0x40] sm:$0xff] (!%p2975_p8)  ;;  %v2468_v32 = vld [vmem:[#allocation12 + $0x50] sm:$0xff] (!%p2975_p8)  ;;  %v3951_v40 = vmov (!%p2975_p8), 0.0  }
 0x240   : > { %v2336_v50 = vrot.slane (!%p2975_p8), %v2327_v48, %v2335_v41  ;;  %3086 = vmatprep.subr.bf16.mxu0 (!%p2975_p8), %v3085_v42  ;;  %v2352_v53 = vld [vmem:[#allocation9 + $0x48] sm:$0xff] (!%p2975_p8)  ;;  %v2472_v38 = vld [vmem:[#allocation12 + $0x70] sm:$0xff] (!%p2975_p8)  ;;  %v2473_v39 = vld [vmem:[#allocation12 + $0x78] sm:$0xff] (!%p2975_p8)  ;;  %3070 = vmatprep.mubr.msk.f32.mxu1 (!%p2975_p8), %vm3950_vm0, %v3951_v40 }
 0x241   : > { %v2470_v35 = vld [vmem:[#allocation12 + $0x60] sm:$0xff] (!%p2975_p8)  ;;  %v3127_v41 = vpack.c.bf16 (!%p2975_p8), %v2473_v39, %v2472_v38  ;;  %v2976_v43 = vld [vmem:[#allocation11] ss:$0 sm:$0xff] (!%p2975_p8) }
 0x242   : > { %v3124_v37 = vpack.c.bf16 (!%p2975_p8), %v2471_v36, %v2470_v35 }
 0x243   : > { %3088 = vmatpush3.bf16.msra.mxu0 (!%p2975_p8), %v3087_v49 }
 0x27b   : > { %v2187_v55 = vpop.f32.mrb[8].mxu0 }
 0x27c   : > { %v2228_v56 = vpop.f32.mrb[8].mxu1  ;;  %v2188_v57 = vadd.f32 %v2187_v55, %v2147_v51  ;;  %v2189_v58 = vpop.f32.mrb[9].mxu0  ;;  %v3089_v51 = vpack.c.bf16 (!%p2975_p8), %v2368_v46, %v2367_v45  ;;  %v2370_v55 = vld [vmem:[#allocation9 + $0xd8] sm:$0xff] (!%p2975_p8) }
 0x27d   : > { %v2230_v59 = vpop.f32.mrb[9].mxu1  ;;  %v2190_v60 = vadd.f32 %v2189_v58, %v2149_v54  ;;  %v2191_v61 = vpop.f32.mrb[10].mxu0  ;;  %v2369_v54 = vld [vmem:[#allocation9 + $0xd0] sm:$0xff] (!%p2975_p8) }
 0x27e   : > { %v2232_v62 = vpop.f32.mrb[10].mxu1  ;;  %v2229_v63 = vadd.f32 %v2228_v56, %v2188_v57  ;;  %v2192_v0 = vpop.f32.mrb[11].mxu0  ;;  %v3091_v57 = vpack.c.bf16 (!%p2975_p8), %v2352_v53, %v2351_v52  ;;  %3090 = vmatprep.subr.bf16.mxu0 (!%p2975_p8), %v3089_v51  ;;  %v2354_v61 = vld [vmem:[#allocation9 + $0x58] sm:$0xff] (!%p2975_p8)  ;;  %v2978_v51 = vld [vmem:[#allocation14] ss:$0 sm:$0xff] (!%p2975_p8) }
 0x27f   : > { %v2233_v1 = vpop.f32.mrb[11].mxu1  ;;  %v2231_v2 = vadd.f32 %v2230_v59, %v2190_v60  ;;  %v3093_v59 = vpack.c.bf16 (!%p2975_p8), %v2370_v55, %v2369_v54  ;;  %v2353_v60 = vld [vmem:[#allocation9 + $0x50] sm:$0xff] (!%p2975_p8)  ;;  %v2371_v62 = vld [vmem:[#allocation9 + $0xe0] sm:$0xff] (!%p2975_p8)  ;;  %v2331_v0 = vsub.s32 (!%p2975_p8), 0, %v2330_v34  ;;  %v3121_v34 = vpack.c.bf16 (!%p2975_p8), %v2469_v33, %v2468_v32 }
 0x280   : > { %3092 = vmatpush3.bf16.msra.mxu0 (!%p2975_p8), %v3091_v57  ;;  %v3095_v1 = vpack.c.bf16 (!%p2975_p8), %v2354_v61, %v2353_v60 }
 0x281   : > { %3094 = vmatprep.subr.bf16.mxu0 (!%p2975_p8), %v3093_v59 }
 0x284   : > { %3096 = vmatpush3.bf16.msra.mxu0 (!%p2975_p8), %v3095_v1 }
 0x2bb   : > { %v2269_v3 = vpop.f32.mrb[12].mxu0 }
 0x2bc   : > { %v2310_v4 = vpop.f32.mrb[12].mxu1  ;;  %v2270_v5 = vadd.f32 %v2269_v3, %v2229_v63  ;;  %v2271_v6 = vpop.f32.mrb[13].mxu0  ;;  %v2372_v63 = vld [vmem:[#allocation9 + $0xe8] sm:$0xff] (!%p2975_p8)  ;;  %v2355_v3 = vld [vmem:[#allocation9 + $0x60] sm:$0xff] (!%p2975_p8) }
 0x2bd   : > { %v2312_v7 = vpop.f32.mrb[13].mxu1  ;;  %v2272_v9 = vadd.f32 %v2271_v6, %v2231_v2  ;;  %v2273_v10 = vpop.f32.mrb[14].mxu0  ;;  %2324 = sbr.rel (%p2975_p8) target bundleno = 1178 (0x49a), region = 84  ;;  %v3097_v2 = vpack.c.bf16 (!%p2975_p8), %v2372_v63, %v2371_v62  ;;  %v2374_v6 = vld [vmem:[#allocation9 + $0xf8] sm:$0xff] (!%p2975_p8) }
 0x2be   : > { %v2314_v11 = vpop.f32.mrb[14].mxu1  ;;  %v2311_v12 = vadd.f32 %v2310_v4, %v2270_v5  ;;  %v2274_v14 = vpop.f32.mrb[15].mxu0  ;;  %v2356_v4 = vld [vmem:[#allocation9 + $0x68] sm:$0xff] (!%p2975_p8)  ;;  %v2373_v5 = vld [vmem:[#allocation9 + $0xf0] sm:$0xff] (!%p2975_p8) }
 0x2bf   : > { %v2315_v15 = vpop.f32.mrb[15].mxu1  ;;  %v2313_v16 = vadd.f32 %v2312_v7, %v2272_v9  ;;  %v2332_v7 = vrot.slane (!%p2975_p8), %v2327_v48, %v2331_v0  ;;  %3098 = vmatprep.subr.bf16.mxu0 (!%p2975_p8), %v3097_v2  ;;  %v3101_v10 = vpack.c.bf16 (!%p2975_p8), %v2374_v6, %v2373_v5  ;;  %v2357_v11 = vld [vmem:[#allocation9 + $0x70] sm:$0xff] (!%p2975_p8) }
 0x2c0   : > { %v2317_v17 = vadd.f32 %v2311_v12, %v419_v8  ;;  %v3099_v8 = vpack.c.bf16 (!%p2975_p8), %v2356_v4, %v2355_v3  ;;  %v2358_v12 = vld [vmem:[#allocation9 + $0x78] sm:$0xff] (!%p2975_p8) }
 0x2c1   : > { %v2318_v18 = vadd.f32 %v2313_v16, %v420_v13  ;;  %v3103_v14 = vpack.c.bf16 (!%p2975_p8), %v2358_v12, %v2357_v11  ;;  %v2458_v16 = vld [vmem:[#allocation12] sm:$0xff] (!%p2975_p8) }
 0x2c2   : > { %2319 = vst [vmem:[#allocation2] sm:$0xff] %v2317_v17  ;;  %3100 = vmatpush3.bf16.msra.mxu0 (!%p2975_p8), %v3099_v8  ;;  %v2459_v17 = vld [vmem:[#allocation12 + $0x8] sm:$0xff] (!%p2975_p8) }
 0x2c3   : > { %2320 = vst [vmem:[#allocation2 + $0x8] sm:$0xff] %v2318_v18  ;;  %3102 = vmatprep.subr.bf16.mxu0 (!%p2975_p8), %v3101_v10  ;;  %v3106_v18 = vpack.c.bf16 (!%p2975_p8), %v2459_v17, %v2458_v16 }
 0x2c5   : > { %3107 = vmatpush3.bf16.msra.mxu1 %v3106_v18 }
 0x2c6   : > { %3104 = vmatpush3.bf16.msra.mxu0 %v3103_v14  ;;  %3108 = vmatprep.subr.bf16.mxu1 %v3949_v19 }
 0x2c9   : > { %v2325_v9 = vld [vmem:[#allocation2] sm:$0xff]  ;;  %3110 = vmatpush3.bf16.msra.mxu1 %v3109_v22 }
 0x2ca   : > { %v2326_v47 = vld [vmem:[#allocation2 + $0x8] sm:$0xff]  ;;  %v2339_v13 = vadd.f32 %v2332_v7, %v2325_v9  ;;  %3111 = vmatprep.subr.bf16.mxu1 %v3949_v19 }
 0x2cb   : > { %v2340_v56 = vadd.f32 %v2336_v50, %v2326_v47 }
 0x2cc   : > { %v2341_v15 = vmax.f32 %v2339_v13, 0.0 }
 0x2cd   : > { %v2342_v58 = vmax.f32 %v2340_v56, 0.0  ;;  %3113 = vmatpush3.bf16.msra.mxu1 %v3112_v25 }
 0x2ce   : > { %3114 = vmatprep.subr.bf16.mxu1 %v3949_v19 }
 0x2cf   : > { %2446 = vmatprep.mubr.f32.mxu0 %v2342_v58 }
 0x2d0   : > { %2447 = vmatmul.mubr.f32.vlgmr.msra.gmra.mrb[0].mxu0 %v2341_v15 }
 0x2d1   : > { %3116 = vmatpush3.bf16.msra.mxu1 %v3115_v28 }
 0x2d2   : > { %3117 = vmatprep.subr.bf16.mxu1 %v3949_v19 }
 0x2d5   : > { %3119 = vmatpush3.bf16.msra.mxu1 %v3118_v31 }
 0x2d6   : > { %3120 = vmatprep.subr.bf16.mxu1 %v3949_v19 }
 0x2d9   : > { %3122 = vmatpush3.bf16.msra.mxu1 %v3121_v34 }
 0x2da   : > { %3123 = vmatprep.subr.bf16.mxu1 %v3949_v19 }
 0x2dd   : > { %3125 = vmatpush3.bf16.msra.mxu1 %v3124_v37 }
 0x2de   : > { %3126 = vmatprep.subr.bf16.mxu1 %v3949_v19 }
 0x2e1   : > { %3128 = vmatpush3.bf16.msra.mxu1 %v3127_v41 }
 0x3a3   : > { %v3018_v42 = vpop.f32.mrb[0].mxu0 }
 0x3a4   : > { %v3019_v44 = vpop.f32.mrb[1].mxu0 }
 0x3a5   : > { %v3020_v45 = vadd.f32 %v3019_v44, %v3018_v42 }
 0x3a7   : > { %v2449_v46 = vadd.f32 %v3020_v45, %v2976_v43 }
 0x3a9   : > { %v2977_v47 = vmul.f32 -1.442695, %v2449_v46 }
 0x3ab   : > { %3637 = vpow2.f32 %v2977_v47 }
 0x3b5   : > { %v3638_v48 = vpop.eup %3637 }
 0x3b6   : > { %v2455_v49 = vadd.f32 1.0, %v3638_v48 }
 0x3b8   : > { %3639 = vrcp.f32 %v2455_v49 }
 0x3c2   : > { %v3640_v50 = vpop.eup %3639 }
 0x3c3   : > { %3071 = vmatmul.mubr.f32.vlgmr.msra.gmra.mrb[0].mxu1 %v3640_v50 }
 0x496   : > { %v2547_v52 = vpop.f32.mrb[0].mxu1 }
 0x497   : > { %v2548_v53 = vadd.f32 %v2978_v51, %v2547_v52  ;;  %v3072_v54 = vpop.f32.mrb[1].mxu1 }
 0x499   : > { %2551 = vst [vmem:[#allocation15] sm:$0xff] %v2548_v53 }
 0x49a PF: > { %p3191_p4 = scmp.eq.s32.totalorder %s4024_s30, 4  ;;  %s3952_s27 = smov [#allocation15]  }
 0x49b   : > { %s2561_s8 = sshll.u32 %s3952_s27, 4  ;;  %s2562_s8 = int_to_ptr.vmem [resolvable:$true] %s2561_s8 }
 0x49c   : > { %s3841_s20 = scalar_lea.vmem %s2562_s8, 128  ;;  %p3848_p11 = scmp.lt.s32.totalorder %s2562_s8, %s2562_s8 }
 0x49d   : > { %p3842_p9 = scmp.ne.s32.totalorder %s2562_s8, %s3841_s20  ;;  %p3849_p0 = scmp.lt.s32.totalorder %s3841_s20, %s3841_s20 }
 0x49f   : > { %p3843_p3 = pnand %p3842_p9, %p3191_p4  ;;  %p3850_p5 = por %p3849_p0, %p3848_p11 }
 0x4a1   : > { %p3844_p10 = pneg %p3843_p3 }
 0x4a3   : > { %p3851_p1 = pnand %p3850_p5, %p3844_p10 }
 0x4a5   : > { %3854 = shalt.err (!%p3851_p1)
}
 0x4a6   : > { %s3855_s10 = scalar_lea.hbm %s4613_s7, 128 }
 0x4a7   : > { %p3856_p13 = scmp.ne.s32.totalorder %s4613_s7, %s3855_s10  ;;  %p3861_p6 = scmp.lt.u32.totalorder %s3855_s10, %s4613_s7 }
 0x4a9   : > { %p3857_p2 = pnand %p3856_p13, %p3191_p4 }
 0x4ab   : > { %p3858_p7 = pneg %p3857_p2 }
 0x4ad   : > { %p3863_p12 = pnand %p3861_p6, %p3858_p7 }
 0x4af   : > { %3866 = shalt.err (!%p3863_p12)
}
 0x4b0   : > { %3154 = dma.vmem_to_hbm [thread:$0]  (%p3191_p4), %s2562_s8, 128, %s4613_s7, [#allocation5]  }
 0x4b1   : > { %3912 = dma.done.wait (%p3191_p4), [#allocation5], 128  }
 0x4b2   : > { %3914 = vsyncadd (%p3191_p4), [#allocation5], 4294967168 }
 0x4b3 PF: > { %s26_s29 = sadd.s32 1, %s3937_s29   ;;  %s4638_s24 = smov %s3921_s25 }
 0x4b4   : > { %p23_p8 = scmp.ge.s32.totalorder %s26_s29, 7   ;;  %s4639_s25 = smov %s3925_s26 }
 0x4b5   : > { %s4640_s26 = smov %s4180_s23  ;;  %s4641_s27 = smov %s3933_s28 }
 0x4b6   : > { %s4642_s28 = smov %s4644_s21  ;;  %25 = sbr.rel (!%p23_p8) target bundleno = 12 (0xc), region = 127 }
 0x4bd   :  { %2574 = vsyncpa [#allocation4], 1 }
 0x4be   :  { %2576 = vsyncpa [#allocation4 + $0x1], 1 }
 0x4bf   :  { %2577 = vsyncpa [#allocation7], 1 }
 0x4c0   :  { %2579 = vsyncpa [#allocation7 + $0x1], 1 }
 0x4c1   :  { %2580 = vsyncpa [#allocation10], 1 }
 0x4c2   :  { %2581 = vsyncpa [#allocation13], 1 }
 0x4c3   :  { %2582 = vsyncpa [#allocation5], 1 }
 0x4c4   :  { %2584 = vsyncpa [#allocation5 + $0x1], 1 }

</bundles_post_ra>
